<compile_context>
chip_gen: v7x
topology: tpu7x:2x2x1
jax: 0.10.0
libtpu: 0.0.40
codegen_flags: <defaults>
</compile_context>

<pallas_src>
import jax
import jax.numpy as jnp
from jax.experimental import pallas as pl
from jax.experimental.pallas import tpu as pltpu

INPUT_SIZE = 784
HIDDEN_SIZE = 500
HIDDEN_PAD = 512          # 500 -> 512: multiple of 128 (lane-dense)
NUM_CLASSES = 10
OUT_PAD = 128             # 10 -> 128: one full vreg lane width
N_LAYERS = 2
BN_EPS = 1e-5


def _bn_train_fused(h, gamma, beta):
    """Train-mode BatchNorm1d, fused to two passes over h.

    Stats are per-feature over the batch axis, so zero-padded feature columns
    do not contaminate the valid columns' statistics.
    """
    inv_n = 1.0 / h.shape[0]
    mean = jnp.sum(h, axis=0, keepdims=True) * inv_n
    mean_sq = jnp.sum(h * h, axis=0, keepdims=True) * inv_n
    var = mean_sq - mean * mean            # biased variance
    scale = gamma * jax.lax.rsqrt(var + BN_EPS)
    shift = beta - mean * scale
    return h * scale + shift


def neuralnet_kernel(x_ref, w_in_ref, w_h1_ref, w_h2_ref, w_out_ref,
                     vecs_ref, o_ref):
    # Packed small vectors: rows = [b_in, b_h1, g1, be1, b_h2, g2, be2, b_out]
    vecs = vecs_ref[...]                    # (8, HIDDEN_PAD) f32
    b_in = vecs[0:1, :]
    b_h1 = vecs[1:2, :]
    g1 = vecs[2:3, :]
    be1 = vecs[3:4, :]
    b_h2 = vecs[4:5, :]
    g2 = vecs[5:6, :]
    be2 = vecs[6:7, :]
    b_out = vecs[7:8, :OUT_PAD]

    # inLayer: Linear(784 -> 500) + ReLU   (bf16 matmul, f32 accumulate)
    x = x_ref[...].astype(jnp.bfloat16)
    h = jnp.dot(x, w_in_ref[...], preferred_element_type=jnp.float32) + b_in
    h = jnp.maximum(h, 0.0)

    # hidden block 1: Linear(500 -> 500) + ReLU + BatchNorm1d(500)
    h = jnp.dot(h.astype(jnp.bfloat16), w_h1_ref[...],
                preferred_element_type=jnp.float32) + b_h1
    h = jnp.maximum(h, 0.0)
    h = _bn_train_fused(h, g1, be1)

    # hidden block 2: Linear(500 -> 500) + ReLU + BatchNorm1d(500)
    h = jnp.dot(h.astype(jnp.bfloat16), w_h2_ref[...],
                preferred_element_type=jnp.float32) + b_h2
    h = jnp.maximum(h, 0.0)
    h = _bn_train_fused(h, g2, be2)

    # outLayer: Linear(500 -> 10) + Softmax(dim=1) over the 10 valid classes
    logits = jnp.dot(h.astype(jnp.bfloat16), w_out_ref[...],
                     preferred_element_type=jnp.float32) + b_out
    col = jax.lax.broadcasted_iota(jnp.int32, logits.shape, 1)
    logits = jnp.where(col < NUM_CLASSES, logits, jnp.float32(-1e30))
    m = jnp.max(logits, axis=1, keepdims=True)
    e = jnp.exp(logits - m)                 # padded lanes underflow to 0
    s = jnp.sum(e, axis=1, keepdims=True)
    o_ref[...] = e * pl.reciprocal(s, approx=True)


def neuralnet_forward(x, params):
    """x: (B, 784) f32.  params: dict from init_params (bf16 weights, packed vecs)."""
    B = x.shape[0]
    args = (
        x,
        params["w_in"], params["w_h1"], params["w_h2"], params["w_out"],
        params["vecs"],
    )
    flops = 2 * B * (INPUT_SIZE * HIDDEN_PAD
                     + 2 * HIDDEN_PAD * HIDDEN_PAD
                     + HIDDEN_PAD * OUT_PAD)
    bytes_accessed = (sum(int(a.size) * a.dtype.itemsize for a in args)
                      + B * OUT_PAD * 4)
    cost = pl.CostEstimate(flops=flops,
                           transcendentals=B * OUT_PAD,
                           bytes_accessed=bytes_accessed)

    out_padded = pl.pallas_call(
        neuralnet_kernel,
        out_shape=jax.ShapeDtypeStruct((B, OUT_PAD), jnp.float32),
        # Tiny problem: every operand is a single full-array VMEM block
        # (~2.4 MB of bf16 weights + small activations, well under VMEM even
        # on v7x's 64 MiB).
        in_specs=[pl.BlockSpec(memory_space=pltpu.MemorySpace.VMEM)] * len(args),
        out_specs=pl.BlockSpec(memory_space=pltpu.MemorySpace.VMEM),
        cost_estimate=cost,
    )(*args)
    return out_padded[:, :NUM_CLASSES]


def init_params(key):
    """Deterministic init. Linear weights stored as (in, out), zero-padded to
    lane-aligned shapes and cast to bf16; biases / BN affine packed into one
    (8, HIDDEN_PAD) f32 array."""
    keys = jax.random.split(key, 8)

    def lin(kw, kb, fan_in, fan_out, pad_in, pad_out):
        bound = float(fan_in) ** -0.5
        w = jax.random.uniform(kw, (fan_in, fan_out), jnp.float32, -bound, bound)
        b = jax.random.uniform(kb, (fan_out,), jnp.float32, -bound, bound)
        w_p = jnp.zeros((pad_in, pad_out), jnp.float32).at[:fan_in, :fan_out].set(w)
        b_p = jnp.zeros((pad_out,), jnp.float32).at[:fan_out].set(b)
        return w_p.astype(jnp.bfloat16), b_p

    w_in, b_in = lin(keys[0], keys[1], INPUT_SIZE, HIDDEN_SIZE,
                     INPUT_SIZE, HIDDEN_PAD)
    w_h1, b_h1 = lin(keys[2], keys[3], HIDDEN_SIZE, HIDDEN_SIZE,
                     HIDDEN_PAD, HIDDEN_PAD)
    w_h2, b_h2 = lin(keys[4], keys[5], HIDDEN_SIZE, HIDDEN_SIZE,
                     HIDDEN_PAD, HIDDEN_PAD)
    w_out, b_out = lin(keys[6], keys[7], HIDDEN_SIZE, NUM_CLASSES,
                       HIDDEN_PAD, OUT_PAD)

    # BatchNorm1d affine (PyTorch default: weight=1, bias=0); padded cols -> 0.
    gamma = jnp.zeros((HIDDEN_PAD,), jnp.float32).at[:HIDDEN_SIZE].set(1.0)
    beta = jnp.zeros((HIDDEN_PAD,), jnp.float32)

    b_out_row = jnp.zeros((HIDDEN_PAD,), jnp.float32).at[:OUT_PAD].set(b_out)
    vecs = jnp.stack(
        [b_in, b_h1, gamma, beta, b_h2, gamma, beta, b_out_row], axis=0
    )  # (8, HIDDEN_PAD) f32

    return dict(w_in=w_in, w_h1=w_h1, w_h2=w_h2, w_out=w_out, vecs=vecs)


if __name__ == "__main__":
    key = jax.random.PRNGKey(0)
    k_x, k_p = jax.random.split(key)

    batch = 8
    x = jax.random.normal(k_x, (batch, INPUT_SIZE), dtype=jnp.float32)
    params = init_params(k_p)

    out = neuralnet_forward(x, params)
    out = jax.block_until_ready(out)

    assert out.shape == (batch, NUM_CLASSES)
    # softmax rows must sum to ~1 (approx reciprocal -> slightly loose tol)
    assert bool(jnp.all(jnp.abs(jnp.sum(out, axis=1) - 1.0) < 1e-2))
    assert bool(jnp.all(out >= 0.0))

    print("KERNEL_OK")
</pallas_src>

<mosaic_0001>
module attributes {stable_mosaic.version = 11 : i64} {
  func.func @neuralnet_kernel(%arg0: memref<8x784xf32, #tpu.memory_space<vmem>>, %arg1: memref<784x512xbf16, #tpu.memory_space<vmem>>, %arg2: memref<512x512xbf16, #tpu.memory_space<vmem>>, %arg3: memref<512x512xbf16, #tpu.memory_space<vmem>>, %arg4: memref<512x128xbf16, #tpu.memory_space<vmem>>, %arg5: memref<8x512xf32, #tpu.memory_space<vmem>>, %arg6: memref<8x128xf32, #tpu.memory_space<vmem>>) attributes {dimension_semantics = [], scalar_prefetch = 0 : i64, scratch_operands = 0 : i64, tpu.core_type = #tpu.core_type<tc>} {
    %c0 = arith.constant 0 : index
    %c0_0 = arith.constant 0 : index
    %0 = vector.load %arg5[%c0, %c0_0] : memref<8x512xf32, #tpu.memory_space<vmem>>, vector<8x512xf32>
    %1 = vector.extract_strided_slice %0 {offsets = [0, 0], sizes = [1, 512], strides = [1, 1]} : vector<8x512xf32> to vector<1x512xf32>
    %2 = vector.extract_strided_slice %0 {offsets = [1, 0], sizes = [1, 512], strides = [1, 1]} : vector<8x512xf32> to vector<1x512xf32>
    %3 = vector.extract_strided_slice %0 {offsets = [2, 0], sizes = [1, 512], strides = [1, 1]} : vector<8x512xf32> to vector<1x512xf32>
    %4 = vector.extract_strided_slice %0 {offsets = [3, 0], sizes = [1, 512], strides = [1, 1]} : vector<8x512xf32> to vector<1x512xf32>
    %5 = vector.extract_strided_slice %0 {offsets = [4, 0], sizes = [1, 512], strides = [1, 1]} : vector<8x512xf32> to vector<1x512xf32>
    %6 = vector.extract_strided_slice %0 {offsets = [5, 0], sizes = [1, 512], strides = [1, 1]} : vector<8x512xf32> to vector<1x512xf32>
    %7 = vector.extract_strided_slice %0 {offsets = [6, 0], sizes = [1, 512], strides = [1, 1]} : vector<8x512xf32> to vector<1x512xf32>
    %8 = vector.extract_strided_slice %0 {offsets = [7, 0], sizes = [1, 128], strides = [1, 1]} : vector<8x512xf32> to vector<1x128xf32>
    %c0_1 = arith.constant 0 : index
    %c0_2 = arith.constant 0 : index
    %9 = vector.load %arg0[%c0_1, %c0_2] : memref<8x784xf32, #tpu.memory_space<vmem>>, vector<8x784xf32>
    %10 = arith.truncf %9 : vector<8x784xf32> to vector<8x784xbf16>
    %c0_3 = arith.constant 0 : index
    %c0_4 = arith.constant 0 : index
    %11 = vector.load %arg1[%c0_3, %c0_4] : memref<784x512xbf16, #tpu.memory_space<vmem>>, vector<784x512xbf16>
    %cst = arith.constant dense<0.000000e+00> : vector<8x512xf32>
    %12 = tpu.matmul %10, %11, %cst {dimension_numbers = #tpu.dot_dimension_numbers<[1], [0], [0], [1], [0, 0, 1, 1], [], []>} : vector<8x784xbf16>, vector<784x512xbf16>, vector<8x512xf32> -> vector<8x512xf32>
    %13 = vector.broadcast %1 : vector<1x512xf32> to vector<8x512xf32>
    %14 = arith.addf %12, %13 : vector<8x512xf32>
    %cst_5 = arith.constant 0.000000e+00 : f32
    %15 = vector.broadcast %cst_5 : f32 to vector<8x512xf32>
    %16 = arith.maximumf %14, %15 : vector<8x512xf32>
    %17 = arith.truncf %16 : vector<8x512xf32> to vector<8x512xbf16>
    %c0_6 = arith.constant 0 : index
    %c0_7 = arith.constant 0 : index
    %18 = vector.load %arg2[%c0_6, %c0_7] : memref<512x512xbf16, #tpu.memory_space<vmem>>, vector<512x512xbf16>
    %cst_8 = arith.constant dense<0.000000e+00> : vector<8x512xf32>
    %19 = tpu.matmul %17, %18, %cst_8 {dimension_numbers = #tpu.dot_dimension_numbers<[1], [0], [0], [1], [0, 0, 1, 1], [], []>} : vector<8x512xbf16>, vector<512x512xbf16>, vector<8x512xf32> -> vector<8x512xf32>
    %20 = vector.broadcast %2 : vector<1x512xf32> to vector<8x512xf32>
    %21 = arith.addf %19, %20 : vector<8x512xf32>
    %cst_9 = arith.constant 0.000000e+00 : f32
    %22 = vector.broadcast %cst_9 : f32 to vector<8x512xf32>
    %23 = arith.maximumf %21, %22 : vector<8x512xf32>
    %cst_10 = arith.constant dense<0.000000e+00> : vector<512xf32>
    %24 = vector.multi_reduction <add>, %23, %cst_10 [0] : vector<8x512xf32> to vector<512xf32>
    %25 = vector.shape_cast %24 : vector<512xf32> to vector<1x512xf32>
    %cst_11 = arith.constant 1.250000e-01 : f32
    %26 = vector.broadcast %cst_11 : f32 to vector<1x512xf32>
    %27 = arith.mulf %25, %26 : vector<1x512xf32>
    %28 = arith.mulf %23, %23 : vector<8x512xf32>
    %cst_12 = arith.constant dense<0.000000e+00> : vector<512xf32>
    %29 = vector.multi_reduction <add>, %28, %cst_12 [0] : vector<8x512xf32> to vector<512xf32>
    %30 = vector.shape_cast %29 : vector<512xf32> to vector<1x512xf32>
    %cst_13 = arith.constant 1.250000e-01 : f32
    %31 = vector.broadcast %cst_13 : f32 to vector<1x512xf32>
    %32 = arith.mulf %30, %31 : vector<1x512xf32>
    %33 = arith.mulf %27, %27 : vector<1x512xf32>
    %34 = arith.subf %32, %33 : vector<1x512xf32>
    %cst_14 = arith.constant 9.99999974E-6 : f32
    %35 = vector.broadcast %cst_14 : f32 to vector<1x512xf32>
    %36 = arith.addf %34, %35 : vector<1x512xf32>
    %37 = math.rsqrt %36 : vector<1x512xf32>
    %38 = arith.mulf %3, %37 : vector<1x512xf32>
    %39 = arith.mulf %27, %38 : vector<1x512xf32>
    %40 = arith.subf %4, %39 : vector<1x512xf32>
    %41 = vector.broadcast %38 : vector<1x512xf32> to vector<8x512xf32>
    %42 = arith.mulf %23, %41 : vector<8x512xf32>
    %43 = vector.broadcast %40 : vector<1x512xf32> to vector<8x512xf32>
    %44 = arith.addf %42, %43 : vector<8x512xf32>
    %45 = arith.truncf %44 : vector<8x512xf32> to vector<8x512xbf16>
    %c0_15 = arith.constant 0 : index
    %c0_16 = arith.constant 0 : index
    %46 = vector.load %arg3[%c0_15, %c0_16] : memref<512x512xbf16, #tpu.memory_space<vmem>>, vector<512x512xbf16>
    %cst_17 = arith.constant dense<0.000000e+00> : vector<8x512xf32>
    %47 = tpu.matmul %45, %46, %cst_17 {dimension_numbers = #tpu.dot_dimension_numbers<[1], [0], [0], [1], [0, 0, 1, 1], [], []>} : vector<8x512xbf16>, vector<512x512xbf16>, vector<8x512xf32> -> vector<8x512xf32>
    %48 = vector.broadcast %5 : vector<1x512xf32> to vector<8x512xf32>
    %49 = arith.addf %47, %48 : vector<8x512xf32>
    %cst_18 = arith.constant 0.000000e+00 : f32
    %50 = vector.broadcast %cst_18 : f32 to vector<8x512xf32>
    %51 = arith.maximumf %49, %50 : vector<8x512xf32>
    %cst_19 = arith.constant dense<0.000000e+00> : vector<512xf32>
    %52 = vector.multi_reduction <add>, %51, %cst_19 [0] : vector<8x512xf32> to vector<512xf32>
    %53 = vector.shape_cast %52 : vector<512xf32> to vector<1x512xf32>
    %cst_20 = arith.constant 1.250000e-01 : f32
    %54 = vector.broadcast %cst_20 : f32 to vector<1x512xf32>
    %55 = arith.mulf %53, %54 : vector<1x512xf32>
    %56 = arith.mulf %51, %51 : vector<8x512xf32>
    %cst_21 = arith.constant dense<0.000000e+00> : vector<512xf32>
    %57 = vector.multi_reduction <add>, %56, %cst_21 [0] : vector<8x512xf32> to vector<512xf32>
    %58 = vector.shape_cast %57 : vector<512xf32> to vector<1x512xf32>
    %cst_22 = arith.constant 1.250000e-01 : f32
    %59 = vector.broadcast %cst_22 : f32 to vector<1x512xf32>
    %60 = arith.mulf %58, %59 : vector<1x512xf32>
    %61 = arith.mulf %55, %55 : vector<1x512xf32>
    %62 = arith.subf %60, %61 : vector<1x512xf32>
    %cst_23 = arith.constant 9.99999974E-6 : f32
    %63 = vector.broadcast %cst_23 : f32 to vector<1x512xf32>
    %64 = arith.addf %62, %63 : vector<1x512xf32>
    %65 = math.rsqrt %64 : vector<1x512xf32>
    %66 = arith.mulf %6, %65 : vector<1x512xf32>
    %67 = arith.mulf %55, %66 : vector<1x512xf32>
    %68 = arith.subf %7, %67 : vector<1x512xf32>
    %69 = vector.broadcast %66 : vector<1x512xf32> to vector<8x512xf32>
    %70 = arith.mulf %51, %69 : vector<8x512xf32>
    %71 = vector.broadcast %68 : vector<1x512xf32> to vector<8x512xf32>
    %72 = arith.addf %70, %71 : vector<8x512xf32>
    %73 = arith.truncf %72 : vector<8x512xf32> to vector<8x512xbf16>
    %c0_24 = arith.constant 0 : index
    %c0_25 = arith.constant 0 : index
    %74 = vector.load %arg4[%c0_24, %c0_25] : memref<512x128xbf16, #tpu.memory_space<vmem>>, vector<512x128xbf16>
    %cst_26 = arith.constant dense<0.000000e+00> : vector<8x128xf32>
    %75 = tpu.matmul %73, %74, %cst_26 {dimension_numbers = #tpu.dot_dimension_numbers<[1], [0], [0], [1], [0, 0, 1, 1], [], []>} : vector<8x512xbf16>, vector<512x128xbf16>, vector<8x128xf32> -> vector<8x128xf32>
    %76 = vector.broadcast %8 : vector<1x128xf32> to vector<8x128xf32>
    %77 = arith.addf %75, %76 : vector<8x128xf32>
    %78 = tpu.iota {dimensions = array<i32: 1>} : vector<8x128xi32>
    %c10_i32 = arith.constant 10 : i32
    %79 = vector.broadcast %c10_i32 : i32 to vector<8x128xi32>
    %80 = arith.cmpi slt, %78, %79 : vector<8x128xi32>
    %cst_27 = arith.constant -1.000000e+30 : f32
    %81 = vector.broadcast %cst_27 : f32 to vector<8x128xf32>
    %82 = arith.select %80, %77, %81 : vector<8x128xi1>, vector<8x128xf32>
    %cst_28 = arith.constant dense<0xFF800000> : vector<8xf32>
    %83 = vector.multi_reduction <maximumf>, %82, %cst_28 [1] : vector<8x128xf32> to vector<8xf32>
    %84 = vector.shape_cast %83 : vector<8xf32> to vector<8x1xf32>
    %85 = vector.broadcast %84 : vector<8x1xf32> to vector<8x128xf32>
    %86 = arith.subf %82, %85 : vector<8x128xf32>
    %87 = math.exp %86 : vector<8x128xf32>
    %cst_29 = arith.constant dense<0.000000e+00> : vector<8xf32>
    %88 = vector.multi_reduction <add>, %87, %cst_29 [1] : vector<8x128xf32> to vector<8xf32>
    %89 = vector.shape_cast %88 : vector<8xf32> to vector<8x1xf32>
    %90 = tpu.reciprocal %89 {approx = true} : vector<8x1xf32> -> vector<8x1xf32>
    %91 = vector.broadcast %90 : vector<8x1xf32> to vector<8x128xf32>
    %92 = arith.mulf %87, %91 : vector<8x128xf32>
    %c0_30 = arith.constant 0 : index
    %c0_31 = arith.constant 0 : index
    %93 = vector.load %arg6[%c0_30, %c0_31] : memref<8x128xf32, #tpu.memory_space<vmem>>, vector<8x128xf32>
    tpu.vector_store %arg6[%c0_30, %c0_31], %92 {strides = array<i32>} : memref<8x128xf32, #tpu.memory_space<vmem>>, vector<8x128xf32>,
    return
  }
}

</mosaic_0001>

<bundles_post_ra>
// kernel: tpu_custom_call.1
= control target key start
LH: loop header
LB: loop body
LE: loop exit
PB: predicated region body
PF: predicated region fallthrough
CT: control target
= control target key end

     0   :  { %11 = vsyncpa [#allocation3], 0  ;;  %s5971_s0 = inlined_call_operand.hbm [shape: f32[8,784], index: 0, kind: input, shape index: {}]   ;;  %s5972_s1 = inlined_call_operand.hbm [shape: bf16[784,512], index: 1, kind: input, shape index: {}]   ;;  %s5973_s2 = inlined_call_operand.hbm [shape: bf16[512,512], index: 2, kind: input, shape index: {}]   ;;  %s5974_s3 = inlined_call_operand.hbm [shape: bf16[512,512], index: 3, kind: input, shape index: {}]   ;;  %s5975_s4 = inlined_call_operand.hbm [shape: bf16[512,128], index: 4, kind: input, shape index: {}]   ;;  %s5976_s5 = inlined_call_operand.hbm [shape: f32[8,512], index: 5, kind: input, shape index: {}]   ;;  %s5977_s6 = inlined_call_operand.hbm [shape: f32[8,128], index: 6, kind: output, shape index: {}]  }
   0x1   :  { %12 = vsyncpa [#allocation6], 0 }
   0x2   :  { %13 = vsyncpa [#allocation9], 0 }
   0x3   :  { %14 = vsyncpa [#allocation12], 0 }
   0x4   :  { %15 = vsyncpa [#allocation4], 0  ;;  %s5709_s21 = smov [#allocation5]   ;;  %s5545_s25 = scalar_lea.hbm %s5972_s1, 25088 }
   0x5   :  { %s31_s22 = sshll.u32 %s5709_s21, 4  ;;  %p5546_p0 = scmp.ne.s32.totalorder %s5972_s1, %s5545_s25  ;;  %s32_s22 = int_to_ptr.vmem [resolvable:$true] %s31_s22 }
   0x6   :  { %p5549_p1 = scmp.lt.u32.totalorder %s5545_s25, %s5972_s1 }
   0x8   :  { %p5551_p2 = pnand %p5549_p1, %p5546_p0 }
   0xa   :  { %5554 = shalt.err (!%p5551_p2)
}
   0xb   :  { %s5555_s30 = scalar_lea.vmem %s32_s22, 25088  ;;  %p5560_p4 = scmp.lt.s32.totalorder %s32_s22, %s32_s22 }
   0xc   :  { %p5556_p3 = scmp.ne.s32.totalorder %s32_s22, %s5555_s30  ;;  %p5561_p5 = scmp.lt.s32.totalorder %s5555_s30, %s5555_s30 }
   0xe   :  { %p5562_p6 = por %p5561_p5, %p5560_p4 }
  0x10   :  { %p5563_p7 = pnand %p5562_p6, %p5556_p3 }
  0x12   :  { %5566 = shalt.err (!%p5563_p7)
}
  0x13   :  { %s5710_s7 = smov 256   ;;  %s5711_s8 = smov 16  }
  0x14   :  { %37 = dma.hbm_to_vmem [thread:$0]  %s5972_s1, 25088, %s32_s22, [#allocation6], %s5710_s7, %s5710_s7, %s5711_s8  }
  0x15   :  { %s5712_s11 = smov [#allocation8]   ;;  %s5713_s13 = smov [#allocation2]  }
  0x16   :  { %s55_s12 = sshll.u32 %s5712_s11, 4  ;;  %s22_s14 = sshll.u32 %s5713_s13, 4  ;;  %s56_s12 = int_to_ptr.vmem [resolvable:$true] %s55_s12  ;;  %s23_s14 = int_to_ptr.vmem [resolvable:$true] %s22_s14 }
  0x17   :  { %s5567_s17 = scalar_lea.hbm %s5974_s3, 16384 }
  0x18   :  { %p5568_p8 = scmp.ne.s32.totalorder %s5974_s3, %s5567_s17  ;;  %p5571_p9 = scmp.lt.u32.totalorder %s5567_s17, %s5974_s3 }
  0x1a   :  { %p5573_p10 = pnand %p5571_p9, %p5568_p8 }
  0x1c   :  { %5576 = shalt.err (!%p5573_p10)
}
  0x1d   :  { %s5577_s1 = scalar_lea.vmem %s56_s12, 16384  ;;  %p5582_p12 = scmp.lt.s32.totalorder %s56_s12, %s56_s12 }
  0x1e   :  { %p5578_p11 = scmp.ne.s32.totalorder %s56_s12, %s5577_s1  ;;  %p5583_p13 = scmp.lt.s32.totalorder %s5577_s1, %s5577_s1 }
  0x20   :  { %p5584_p0 = por %p5583_p13, %p5582_p12 }
  0x22   :  { %p5585_p1 = pnand %p5584_p0, %p5578_p11 }
  0x24   :  { %5588 = shalt.err (!%p5585_p1)
}
  0x25   :  { %61 = dma.hbm_to_vmem [thread:$0]  %s5974_s3, 16384, %s56_s12, [#allocation9], %s5710_s7, %s5710_s7, %s5711_s8  }
  0x26   :  { %s5589_s26 = scalar_lea.hbm %s5971_s0, 896 }
  0x27   :  { %p5590_p2 = scmp.ne.s32.totalorder %s5971_s0, %s5589_s26  ;;  %p5593_p3 = scmp.lt.u32.totalorder %s5589_s26, %s5971_s0 }
  0x29   :  { %p5595_p4 = pnand %p5593_p3, %p5590_p2 }
  0x2b   :  { %5598 = shalt.err (!%p5595_p4)
}
  0x2c   :  { %s5599_s9 = scalar_lea.vmem %s23_s14, 896  ;;  %p5604_p6 = scmp.lt.s32.totalorder %s23_s14, %s23_s14 }
  0x2d   :  { %p5600_p5 = scmp.ne.s32.totalorder %s23_s14, %s5599_s9  ;;  %p5605_p7 = scmp.lt.s32.totalorder %s5599_s9, %s5599_s9 }
  0x2f   :  { %p5606_p8 = por %p5605_p7, %p5604_p6 }
  0x31   :  { %p5607_p9 = pnand %p5606_p8, %p5600_p5 }
  0x33   :  { %5610 = shalt.err (!%p5607_p9)
}
  0x34   :  { %25 = dma.hbm_to_vmem [thread:$0]  %s5971_s0, 896, %s23_s14, [#allocation3]  }
  0x35   :  { %s5714_s11 = smov [#allocation7]   ;;  %s5715_s13 = smov [#allocation10]  }
  0x36   :  { %s43_s12 = sshll.u32 %s5714_s11, 4  ;;  %s67_s15 = sshll.u32 %s5715_s13, 4  ;;  %s44_s12 = int_to_ptr.vmem [resolvable:$true] %s43_s12  ;;  %s68_s15 = int_to_ptr.vmem [resolvable:$true] %s67_s15 }
  0x37   :  { %s5611_s18 = scalar_lea.hbm %s5973_s2, 16384 }
  0x38   :  { %p5612_p10 = scmp.ne.s32.totalorder %s5973_s2, %s5611_s18  ;;  %p5615_p11 = scmp.lt.u32.totalorder %s5611_s18, %s5973_s2 }
  0x3a   :  { %p5617_p12 = pnand %p5615_p11, %p5612_p10 }
  0x3c   :  { %5620 = shalt.err (!%p5617_p12)
}
  0x3d   :  { %s5621_s0 = scalar_lea.vmem %s44_s12, 16384  ;;  %p5626_p0 = scmp.lt.s32.totalorder %s44_s12, %s44_s12 }
  0x3e   :  { %p5622_p13 = scmp.ne.s32.totalorder %s44_s12, %s5621_s0  ;;  %p5627_p1 = scmp.lt.s32.totalorder %s5621_s0, %s5621_s0 }
  0x40   :  { %p5628_p2 = por %p5627_p1, %p5626_p0 }
  0x42   :  { %p5629_p3 = pnand %p5628_p2, %p5622_p13 }
  0x44   :  { %5632 = shalt.err (!%p5629_p3)
}
  0x45   :  { %49 = dma.hbm_to_vmem [thread:$0]  %s5973_s2, 16384, %s44_s12, [#allocation6], %s5710_s7, %s5710_s7, %s5711_s8  }
  0x46   :  { %s5633_s25 = scalar_lea.hbm %s5975_s4, 4096 }
  0x47   :  { %p5634_p4 = scmp.ne.s32.totalorder %s5975_s4, %s5633_s25  ;;  %p5637_p5 = scmp.lt.u32.totalorder %s5633_s25, %s5975_s4 }
  0x49   :  { %p5639_p6 = pnand %p5637_p5, %p5634_p4 }
  0x4b   :  { %5642 = shalt.err (!%p5639_p6)
}
  0x4c   :  { %s5643_s30 = scalar_lea.vmem %s68_s15, 4096  ;;  %p5648_p8 = scmp.lt.s32.totalorder %s68_s15, %s68_s15 }
  0x4d   :  { %p5644_p7 = scmp.ne.s32.totalorder %s68_s15, %s5643_s30  ;;  %p5649_p9 = scmp.lt.s32.totalorder %s5643_s30, %s5643_s30 }
  0x4f   :  { %p5650_p10 = por %p5649_p9, %p5648_p8 }
  0x51   :  { %p5651_p11 = pnand %p5650_p10, %p5644_p7 }
  0x53   :  { %5654 = shalt.err (!%p5651_p11)
}
  0x54   :  { %s5716_s2 = smov 64   ;;  %s5717_s7 = smov 4  }
  0x55   :  { %73 = dma.hbm_to_vmem [thread:$0]  %s5975_s4, 4096, %s68_s15, [#allocation9], %s5716_s2, %s5716_s2, %s5717_s7  }
  0x56   :  { %s5718_s3 = smov [#allocation11]   ;;  %s5655_s13 = scalar_lea.hbm %s5976_s5, 512 }
  0x57   :  { %s80_s10 = sshll.u32 %s5718_s3, 4  ;;  %p5656_p12 = scmp.ne.s32.totalorder %s5976_s5, %s5655_s13  ;;  %s81_s10 = int_to_ptr.vmem [resolvable:$true] %s80_s10 }
  0x58   :  { %p5659_p13 = scmp.lt.u32.totalorder %s5655_s13, %s5976_s5 }
  0x5a   :  { %p5661_p0 = pnand %p5659_p13, %p5656_p12 }
  0x5c   :  { %5664 = shalt.err (!%p5661_p0)
}
  0x5d   :  { %s5665_s20 = scalar_lea.vmem %s81_s10, 512  ;;  %p5670_p2 = scmp.lt.s32.totalorder %s81_s10, %s81_s10 }
  0x5e   :  { %p5666_p1 = scmp.ne.s32.totalorder %s81_s10, %s5665_s20  ;;  %p5671_p3 = scmp.lt.s32.totalorder %s5665_s20, %s5665_s20 }
  0x60   :  { %p5672_p4 = por %p5671_p3, %p5670_p2 }
  0x62   :  { %p5673_p5 = pnand %p5672_p4, %p5666_p1 }
  0x64   :  { %5676 = shalt.err (!%p5673_p5)
}
  0x65   :  { %83 = dma.hbm_to_vmem [thread:$0]  %s5976_s5, 512, %s81_s10, [#allocation12]  }
  0x66   :  { %5699 = dma.done.wait [#allocation3], 896  }
  0x67   :  { %5700 = vsyncadd [#allocation3], 4294966400 }
  0x68   :  { %5701 = dma.done.wait [#allocation6], 41472  }
  0x69   :  { %5702 = vsyncadd [#allocation6], 4294925824 }
  0x6a   :  { %5703 = dma.done.wait [#allocation9], 20480  }
  0x6b   :  { %5704 = vsyncadd [#allocation9], 4294946816 }
  0x6c   :  { %5705 = dma.done.wait [#allocation12], 512  }
  0x6d   :  { %5706 = vsyncadd [#allocation12], 4294966784  ;;  %v4811_v0 = vld [vmem:[#allocation5 + $0x4] ss:$16 sps:$4 sm:$0xff]   ;;  %v4813_v1 = vld [vmem:[#allocation5 + $0xc] ss:$16 sps:$4 sm:$0xff]  }
  0x6e   :  { %1317 = vmatprep.subr.bf16.mxu0 %v4811_v0  ;;  %v4815_v2 = vld [vmem:[#allocation5] ss:$16 sps:$4 sm:$0xff]   ;;  %v4816_v3 = vld [vmem:[#allocation5 + $0x8] ss:$16 sps:$4 sm:$0xff]   ;;  %1481 = vmatprep.subr.bf16.mxu1 %v4813_v1  ;;  %v4817_v4 = vld [vmem:[#allocation5 + $0x24] ss:$16 sps:$4 sm:$0xff]  }
  0x6f   :  { %1318 = vmatpush1.bf16.msra.mxu0 %v4815_v2  ;;  %1482 = vmatpush1.bf16.msra.mxu1 %v4816_v3  ;;  %v4819_v5 = vld [vmem:[#allocation5 + $0x2c] ss:$16 sps:$4 sm:$0xff]   ;;  %v4821_v6 = vld [vmem:[#allocation5 + $0x20] ss:$16 sps:$4 sm:$0xff]   ;;  %v4822_v7 = vld [vmem:[#allocation5 + $0x28] ss:$16 sps:$4 sm:$0xff]  }
  0x70   :  { %1319 = vmatprep.subr.bf16.mxu0 %v4817_v4  ;;  %1483 = vmatprep.subr.bf16.mxu1 %v4819_v5  ;;  %v4823_v8 = vld [vmem:[#allocation5 + $0x44] ss:$16 sps:$4 sm:$0xff]   ;;  %v4825_v9 = vld [vmem:[#allocation5 + $0x4c] ss:$16 sps:$4 sm:$0xff]   ;;  %v4827_v10 = vld [vmem:[#allocation5 + $0x40] ss:$16 sps:$4 sm:$0xff]  }
  0x71   :  { %v4828_v11 = vld [vmem:[#allocation5 + $0x48] ss:$16 sps:$4 sm:$0xff]   ;;  %v4829_v12 = vld [vmem:[#allocation5 + $0x64] ss:$16 sps:$4 sm:$0xff]   ;;  %v4831_v13 = vld [vmem:[#allocation5 + $0x6c] ss:$16 sps:$4 sm:$0xff]  }
  0x72   :  { %v4833_v14 = vld [vmem:[#allocation5 + $0x60] ss:$16 sps:$4 sm:$0xff]   ;;  %v4834_v15 = vld [vmem:[#allocation5 + $0x68] ss:$16 sps:$4 sm:$0xff]   ;;  %v4835_v16 = vld [vmem:[#allocation5 + $0x84] ss:$16 sps:$4 sm:$0xff]  }
  0x73   :  { %1320 = vmatpush1.bf16.msra.mxu0 %v4821_v6  ;;  %1484 = vmatpush1.bf16.msra.mxu1 %v4822_v7  ;;  %v4837_v17 = vld [vmem:[#allocation5 + $0x8c] ss:$16 sps:$4 sm:$0xff]   ;;  %v4839_v18 = vld [vmem:[#allocation5 + $0x80] ss:$16 sps:$4 sm:$0xff]   ;;  %v4840_v19 = vld [vmem:[#allocation5 + $0x88] ss:$16 sps:$4 sm:$0xff]  }
  0x74   :  { %1321 = vmatprep.subr.bf16.mxu0 %v4823_v8  ;;  %1485 = vmatprep.subr.bf16.mxu1 %v4825_v9  ;;  %v4841_v20 = vld [vmem:[#allocation5 + $0xa4] ss:$16 sps:$4 sm:$0xff]   ;;  %v4843_v21 = vld [vmem:[#allocation5 + $0xac] ss:$16 sps:$4 sm:$0xff]   ;;  %v4845_v22 = vld [vmem:[#allocation5 + $0xa0] ss:$16 sps:$4 sm:$0xff]  }
  0x75   :  { %v4846_v23 = vld [vmem:[#allocation5 + $0xa8] ss:$16 sps:$4 sm:$0xff]   ;;  %v4847_v24 = vld [vmem:[#allocation5 + $0xc4] ss:$16 sps:$4 sm:$0xff]   ;;  %v4849_v25 = vld [vmem:[#allocation5 + $0xcc] ss:$16 sps:$4 sm:$0xff]  }
  0x76   :  { %v4851_v26 = vld [vmem:[#allocation5 + $0xc0] ss:$16 sps:$4 sm:$0xff]   ;;  %v4852_v27 = vld [vmem:[#allocation5 + $0xc8] ss:$16 sps:$4 sm:$0xff]   ;;  %v4853_v28 = vld [vmem:[#allocation5 + $0xe4] ss:$16 sps:$4 sm:$0xff]  }
  0x77   :  { %1322 = vmatpush1.bf16.msra.mxu0 %v4827_v10  ;;  %1486 = vmatpush1.bf16.msra.mxu1 %v4828_v11  ;;  %v4855_v29 = vld [vmem:[#allocation5 + $0xec] ss:$16 sps:$4 sm:$0xff]   ;;  %v4857_v30 = vld [vmem:[#allocation5 + $0xe0] ss:$16 sps:$4 sm:$0xff]   ;;  %v4858_v31 = vld [vmem:[#allocation5 + $0xe8] ss:$16 sps:$4 sm:$0xff]  }
  0x78   :  { %1323 = vmatprep.subr.bf16.mxu0 %v4829_v12  ;;  %1487 = vmatprep.subr.bf16.mxu1 %v4831_v13  ;;  %v4859_v32 = vld [vmem:[#allocation5 + $0x104] ss:$16 sps:$4 sm:$0xff]   ;;  %v4861_v33 = vld [vmem:[#allocation5 + $0x10c] ss:$16 sps:$4 sm:$0xff]   ;;  %v4863_v34 = vld [vmem:[#allocation5 + $0x100] ss:$16 sps:$4 sm:$0xff]  }
  0x79   :  { %v4864_v35 = vld [vmem:[#allocation5 + $0x108] ss:$16 sps:$4 sm:$0xff]   ;;  %v4865_v36 = vld [vmem:[#allocation5 + $0x124] ss:$16 sps:$4 sm:$0xff]   ;;  %v4867_v37 = vld [vmem:[#allocation5 + $0x12c] ss:$16 sps:$4 sm:$0xff]  }
  0x7a   :  { %v4869_v38 = vld [vmem:[#allocation5 + $0x120] ss:$16 sps:$4 sm:$0xff]   ;;  %v4870_v39 = vld [vmem:[#allocation5 + $0x128] ss:$16 sps:$4 sm:$0xff]   ;;  %v4871_v40 = vld [vmem:[#allocation5 + $0x144] ss:$16 sps:$4 sm:$0xff]  }
  0x7b   :  { %1324 = vmatpush1.bf16.msra.mxu0 %v4833_v14  ;;  %1488 = vmatpush1.bf16.msra.mxu1 %v4834_v15  ;;  %v4873_v41 = vld [vmem:[#allocation5 + $0x14c] ss:$16 sps:$4 sm:$0xff]   ;;  %v4875_v42 = vld [vmem:[#allocation5 + $0x140] ss:$16 sps:$4 sm:$0xff]   ;;  %v4876_v43 = vld [vmem:[#allocation5 + $0x148] ss:$16 sps:$4 sm:$0xff]  }
  0x7c   :  { %1325 = vmatprep.subr.bf16.mxu0 %v4835_v16  ;;  %1489 = vmatprep.subr.bf16.mxu1 %v4837_v17  ;;  %v4877_v44 = vld [vmem:[#allocation5 + $0x164] ss:$16 sps:$4 sm:$0xff]   ;;  %v4879_v45 = vld [vmem:[#allocation5 + $0x16c] ss:$16 sps:$4 sm:$0xff]   ;;  %v4881_v47 = vld [vmem:[#allocation5 + $0x160] ss:$16 sps:$4 sm:$0xff]  }
  0x7d   :  { %v108_v46 = vld [vmem:[#allocation2 + $0x8] sm:$0xff]  ;;  %v4882_v49 = vld [vmem:[#allocation5 + $0x168] ss:$16 sps:$4 sm:$0xff]   ;;  %v4885_v51 = vld [vmem:[#allocation5 + $0x18c] ss:$16 sps:$4 sm:$0xff]   ;;  %vm1313_vm0 = vcmask 130048  }
  0x7e   :  { %v115_v48 = vpack.c.bf16 %v108_v46, %v108_v46  ;;  %v4883_v50 = vld [vmem:[#allocation5 + $0x184] ss:$16 sps:$4 sm:$0xff]   ;;  %v4887_v52 = vld [vmem:[#allocation5 + $0x180] ss:$16 sps:$4 sm:$0xff]   ;;  %v4888_v53 = vld [vmem:[#allocation5 + $0x188] ss:$16 sps:$4 sm:$0xff]  }
  0x7f   :  { %1326 = vmatpush1.bf16.msra.mxu0 %v4839_v18  ;;  %1490 = vmatpush1.bf16.msra.mxu1 %v4840_v19  ;;  %v4889_v54 = vld [vmem:[#allocation5 + $0x1a4] ss:$16 sps:$4 sm:$0xff]   ;;  %v4891_v55 = vld [vmem:[#allocation5 + $0x1ac] ss:$16 sps:$4 sm:$0xff]   ;;  %v4893_v56 = vld [vmem:[#allocation5 + $0x1a0] ss:$16 sps:$4 sm:$0xff]  }
  0x80   :  { %1327 = vmatprep.subr.bf16.mxu0 %v4841_v20  ;;  %1491 = vmatprep.subr.bf16.mxu1 %v4843_v21  ;;  %v4894_v57 = vld [vmem:[#allocation5 + $0x1a8] ss:$16 sps:$4 sm:$0xff]   ;;  %v4895_v58 = vld [vmem:[#allocation5 + $0x1c4] ss:$16 sps:$4 sm:$0xff]   ;;  %v4897_v59 = vld [vmem:[#allocation5 + $0x1cc] ss:$16 sps:$4 sm:$0xff]  }
  0x81   :  { %1349 = vmatprep.mubr.bf16.mxu0 %v115_v48  ;;  %1513 = vmatprep.mubr.bf16.mxu1 %v115_v48  ;;  %v4899_v60 = vld [vmem:[#allocation5 + $0x1c0] ss:$16 sps:$4 sm:$0xff]   ;;  %v4900_v61 = vld [vmem:[#allocation5 + $0x1c8] ss:$16 sps:$4 sm:$0xff]   ;;  %v4901_v62 = vld [vmem:[#allocation5 + $0x1e4] ss:$16 sps:$4 sm:$0xff]  }
  0x82   :  { %v4903_v63 = vld [vmem:[#allocation5 + $0x1ec] ss:$16 sps:$4 sm:$0xff]   ;;  %v4905_v0 = vld [vmem:[#allocation5 + $0x1e0] ss:$16 sps:$4 sm:$0xff]   ;;  %v4906_v1 = vld [vmem:[#allocation5 + $0x1e8] ss:$16 sps:$4 sm:$0xff]  }
  0x83   :  { %1328 = vmatpush1.bf16.msra.mxu0 %v4845_v22  ;;  %1492 = vmatpush1.bf16.msra.mxu1 %v4846_v23  ;;  %v107_v2 = vld [vmem:[#allocation2] sm:$0xff]  ;;  %v4909_v3 = vld [vmem:[#allocation5 + $0x204] ss:$16 sps:$4 sm:$0xff]   ;;  %v4907_v6 = vld [vmem:[#allocation5 + $0x200] ss:$16 sps:$4 sm:$0xff]   ;;  %s5720_s5 = smov [#allocation13]  }
  0x84   :  { %1329 = vmatprep.subr.bf16.mxu0 %v4847_v24  ;;  %1493 = vmatprep.subr.bf16.mxu1 %v4849_v25  ;;  %v4912_v4 = vld [vmem:[#allocation5 + $0x20c] ss:$16 sps:$4 sm:$0xff]   ;;  %v114_v5 = vpack.c.bf16 %v107_v2, %v107_v2  ;;  %v4910_v7 = vld [vmem:[#allocation5 + $0x208] ss:$16 sps:$4 sm:$0xff]   ;;  %v4915_v8 = vld [vmem:[#allocation5 + $0x224] ss:$16 sps:$4 sm:$0xff]  }
  0x85   :  { %v4918_v9 = vld [vmem:[#allocation5 + $0x22c] ss:$16 sps:$4 sm:$0xff]   ;;  %v4913_v10 = vld [vmem:[#allocation5 + $0x220] ss:$16 sps:$4 sm:$0xff]   ;;  %v4916_v11 = vld [vmem:[#allocation5 + $0x228] ss:$16 sps:$4 sm:$0xff]  }
  0x86   :  { %v4921_v12 = vld [vmem:[#allocation5 + $0x244] ss:$16 sps:$4 sm:$0xff]   ;;  %v4924_v13 = vld [vmem:[#allocation5 + $0x24c] ss:$16 sps:$4 sm:$0xff]   ;;  %v4919_v14 = vld [vmem:[#allocation5 + $0x240] ss:$16 sps:$4 sm:$0xff]  }
  0x87   :  { %1330 = vmatpush1.bf16.msra.mxu0 %v4851_v26  ;;  %1494 = vmatpush1.bf16.msra.mxu1 %v4852_v27  ;;  %v4922_v15 = vld [vmem:[#allocation5 + $0x248] ss:$16 sps:$4 sm:$0xff]   ;;  %v4927_v16 = vld [vmem:[#allocation5 + $0x264] ss:$16 sps:$4 sm:$0xff]   ;;  %v4930_v17 = vld [vmem:[#allocation5 + $0x26c] ss:$16 sps:$4 sm:$0xff]  }
  0x88   :  { %1331 = vmatprep.subr.bf16.mxu0 %v4853_v28  ;;  %1495 = vmatprep.subr.bf16.mxu1 %v4855_v29  ;;  %v4925_v18 = vld [vmem:[#allocation5 + $0x260] ss:$16 sps:$4 sm:$0xff]   ;;  %v4928_v19 = vld [vmem:[#allocation5 + $0x268] ss:$16 sps:$4 sm:$0xff]   ;;  %v4933_v20 = vld [vmem:[#allocation5 + $0x284] ss:$16 sps:$4 sm:$0xff]  }
  0x89   :  { %v4936_v21 = vld [vmem:[#allocation5 + $0x28c] ss:$16 sps:$4 sm:$0xff]   ;;  %v4931_v22 = vld [vmem:[#allocation5 + $0x280] ss:$16 sps:$4 sm:$0xff]   ;;  %v4934_v23 = vld [vmem:[#allocation5 + $0x288] ss:$16 sps:$4 sm:$0xff]  }
  0x8a   :  { %v4939_v24 = vld [vmem:[#allocation5 + $0x2a4] ss:$16 sps:$4 sm:$0xff]   ;;  %v4942_v25 = vld [vmem:[#allocation5 + $0x2ac] ss:$16 sps:$4 sm:$0xff]   ;;  %v4937_v26 = vld [vmem:[#allocation5 + $0x2a0] ss:$16 sps:$4 sm:$0xff]  }
  0x8b   :  { %1332 = vmatpush1.bf16.msra.mxu0 %v4857_v30  ;;  %1496 = vmatpush1.bf16.msra.mxu1 %v4858_v31  ;;  %v4940_v27 = vld [vmem:[#allocation5 + $0x2a8] ss:$16 sps:$4 sm:$0xff]   ;;  %v4945_v28 = vld [vmem:[#allocation5 + $0x2c4] ss:$16 sps:$4 sm:$0xff]   ;;  %v4948_v29 = vld [vmem:[#allocation5 + $0x2cc] ss:$16 sps:$4 sm:$0xff]  }
  0x8c   :  { %1333 = vmatprep.subr.bf16.mxu0 %v4859_v32  ;;  %1497 = vmatprep.subr.bf16.mxu1 %v4861_v33  ;;  %v110_v30 = vld [vmem:[#allocation2 + $0x18] sm:$0xff]  ;;  %v4946_v33 = vld [vmem:[#allocation5 + $0x2c8] ss:$16 sps:$4 sm:$0xff]   ;;  %s4205_s21 = sshll.u32 %s5720_s5, 4  ;;  %s4206_s21 = int_to_ptr.vmem [resolvable:$true] %s4205_s21 }
  0x8d   :  { %v4943_v31 = vld [vmem:[#allocation5 + $0x2c0] ss:$16 sps:$4 sm:$0xff]   ;;  %v117_v32 = vpack.c.bf16 %v110_v30, %v110_v30  ;;  %v4969_v46 = vld [vmem:[#allocation5 + $0x344] ss:$16 sps:$4 sm:$0xff]   ;;  %s5677_s1 = scalar_lea.vmem %s4206_s21, 128  ;;  %p5682_p7 = scmp.lt.s32.totalorder %s4206_s21, %s4206_s21 }
  0x8e   :  { %v4967_v48 = vld [vmem:[#allocation5 + $0x340] ss:$16 sps:$4 sm:$0xff]   ;;  %v4999_v2 = vld [vmem:[#allocation5 + $0x3e4] ss:$16 sps:$4 sm:$0xff]   ;;  %p5678_p6 = scmp.ne.s32.totalorder %s4206_s21, %s5677_s1  ;;  %p5683_p8 = scmp.lt.s32.totalorder %s5677_s1, %s5677_s1 }
  0x8f   :  { %1334 = vmatpush1.bf16.msra.mxu0 %v4863_v34  ;;  %1498 = vmatpush1.bf16.msra.mxu1 %v4864_v35  ;;  %v4951_v34 = vld [vmem:[#allocation5 + $0x2e4] ss:$16 sps:$4 sm:$0xff]   ;;  %v4954_v35 = vld [vmem:[#allocation5 + $0x2ec] ss:$16 sps:$4 sm:$0xff]  }
  0x90   :  { %1335 = vmatprep.subr.bf16.mxu0 %v4865_v36  ;;  %1499 = vmatprep.subr.bf16.mxu1 %v4867_v37  ;;  %v4949_v36 = vld [vmem:[#allocation5 + $0x2e0] ss:$16 sps:$4 sm:$0xff]   ;;  %v4952_v37 = vld [vmem:[#allocation5 + $0x2e8] ss:$16 sps:$4 sm:$0xff]   ;;  %v5035_v30 = vld [vmem:[#allocation5 + $0x4a4] ss:$16 sps:$4 sm:$0xff]   ;;  %p5684_p9 = por %p5683_p8, %p5682_p7 }
  0x92   :  { %p5685_p10 = pnand %p5684_p9, %p5678_p6 }
  0x93   :  { %1336 = vmatpush1.bf16.msra.mxu0 %v4869_v38  ;;  %1500 = vmatpush1.bf16.msra.mxu1 %v4870_v39  ;;  %v4957_v38 = vld [vmem:[#allocation5 + $0x304] ss:$16 sps:$4 sm:$0xff]   ;;  %v4960_v39 = vld [vmem:[#allocation5 + $0x30c] ss:$16 sps:$4 sm:$0xff]  }
  0x94   :  { %1337 = vmatprep.subr.bf16.mxu0 %v4871_v40  ;;  %1501 = vmatprep.subr.bf16.mxu1 %v4873_v41  ;;  %v4955_v40 = vld [vmem:[#allocation5 + $0x300] ss:$16 sps:$4 sm:$0xff]   ;;  %v4958_v41 = vld [vmem:[#allocation5 + $0x308] ss:$16 sps:$4 sm:$0xff]  }
  0x97   :  { %1338 = vmatpush1.bf16.msra.mxu0 %v4875_v42  ;;  %1502 = vmatpush1.bf16.msra.mxu1 %v4876_v43  ;;  %v4963_v42 = vld [vmem:[#allocation5 + $0x324] ss:$16 sps:$4 sm:$0xff]   ;;  %v4966_v43 = vld [vmem:[#allocation5 + $0x32c] ss:$16 sps:$4 sm:$0xff]  }
  0x98   :  { %1339 = vmatprep.subr.bf16.mxu0 %v4877_v44  ;;  %1503 = vmatprep.subr.bf16.mxu1 %v4879_v45  ;;  %v4961_v44 = vld [vmem:[#allocation5 + $0x320] ss:$16 sps:$4 sm:$0xff]   ;;  %v4964_v45 = vld [vmem:[#allocation5 + $0x328] ss:$16 sps:$4 sm:$0xff]  }
  0x9b   :  { %1340 = vmatpush1.bf16.msra.mxu0 %v4881_v47  ;;  %1504 = vmatpush1.bf16.msra.mxu1 %v4882_v49  ;;  %v4972_v47 = vld [vmem:[#allocation5 + $0x34c] ss:$16 sps:$4 sm:$0xff]   ;;  %v4970_v49 = vld [vmem:[#allocation5 + $0x348] ss:$16 sps:$4 sm:$0xff]  }
  0x9c   :  { %1341 = vmatprep.subr.bf16.mxu0 %v4883_v50  ;;  %1505 = vmatprep.subr.bf16.mxu1 %v4885_v51  ;;  %v4975_v50 = vld [vmem:[#allocation5 + $0x364] ss:$16 sps:$4 sm:$0xff]   ;;  %v4978_v51 = vld [vmem:[#allocation5 + $0x36c] ss:$16 sps:$4 sm:$0xff]  }
  0x9f   :  { %1342 = vmatpush1.bf16.msra.mxu0 %v4887_v52  ;;  %1506 = vmatpush1.bf16.msra.mxu1 %v4888_v53  ;;  %v4973_v52 = vld [vmem:[#allocation5 + $0x360] ss:$16 sps:$4 sm:$0xff]   ;;  %v4976_v53 = vld [vmem:[#allocation5 + $0x368] ss:$16 sps:$4 sm:$0xff]  }
  0xa0   :  { %1343 = vmatprep.subr.bf16.mxu0 %v4889_v54  ;;  %1507 = vmatprep.subr.bf16.mxu1 %v4891_v55  ;;  %v4981_v54 = vld [vmem:[#allocation5 + $0x384] ss:$16 sps:$4 sm:$0xff]   ;;  %v4984_v55 = vld [vmem:[#allocation5 + $0x38c] ss:$16 sps:$4 sm:$0xff]  }
  0xa3   :  { %1344 = vmatpush1.bf16.msra.mxu0 %v4893_v56  ;;  %1508 = vmatpush1.bf16.msra.mxu1 %v4894_v57  ;;  %v4979_v56 = vld [vmem:[#allocation5 + $0x380] ss:$16 sps:$4 sm:$0xff]   ;;  %v4982_v57 = vld [vmem:[#allocation5 + $0x388] ss:$16 sps:$4 sm:$0xff]  }
  0xa4   :  { %1345 = vmatprep.subr.bf16.mxu0 %v4895_v58  ;;  %1509 = vmatprep.subr.bf16.mxu1 %v4897_v59  ;;  %v4987_v58 = vld [vmem:[#allocation5 + $0x3a4] ss:$16 sps:$4 sm:$0xff]   ;;  %v4990_v59 = vld [vmem:[#allocation5 + $0x3ac] ss:$16 sps:$4 sm:$0xff]  }
  0xa7   :  { %1346 = vmatpush1.bf16.msra.mxu0 %v4899_v60  ;;  %1510 = vmatpush1.bf16.msra.mxu1 %v4900_v61  ;;  %v4985_v60 = vld [vmem:[#allocation5 + $0x3a0] ss:$16 sps:$4 sm:$0xff]   ;;  %v4988_v61 = vld [vmem:[#allocation5 + $0x3a8] ss:$16 sps:$4 sm:$0xff]  }
  0xa8   :  { %1347 = vmatprep.subr.bf16.mxu0 %v4901_v62  ;;  %1511 = vmatprep.subr.bf16.mxu1 %v4903_v63  ;;  %v4993_v62 = vld [vmem:[#allocation5 + $0x3c4] ss:$16 sps:$4 sm:$0xff]   ;;  %v4996_v63 = vld [vmem:[#allocation5 + $0x3cc] ss:$16 sps:$4 sm:$0xff]  }
  0xab   :  { %1348 = vmatpush1.bf16.msra.mxu0 %v4905_v0  ;;  %1512 = vmatpush1.bf16.msra.mxu1 %v4906_v1  ;;  %v4991_v0 = vld [vmem:[#allocation5 + $0x3c0] ss:$16 sps:$4 sm:$0xff]   ;;  %v4994_v1 = vld [vmem:[#allocation5 + $0x3c8] ss:$16 sps:$4 sm:$0xff]  }
  0xac   :  { %1358 = vmatprep.subr.bf16.mxu0 %v4909_v3  ;;  %1522 = vmatprep.subr.bf16.mxu1 %v4912_v4  ;;  %v5002_v3 = vld [vmem:[#allocation5 + $0x3ec] ss:$16 sps:$4 sm:$0xff]   ;;  %v4997_v4 = vld [vmem:[#allocation5 + $0x3e0] ss:$16 sps:$4 sm:$0xff]  }
  0xae   :  { %1350 = vmatmul.mubr.bf16.vlgmr.msra.gmra.mrb[0].mxu0 %v114_v5  ;;  %1514 = vmatmul.mubr.bf16.vlgmr.msra.gmra.mrb[0].mxu1 %v114_v5  ;;  %v5000_v5 = vld [vmem:[#allocation5 + $0x3e8] ss:$16 sps:$4 sm:$0xff]  }
  0xaf   :  { %1359 = vmatpush1.bf16.msra.mxu0 %v4907_v6  ;;  %1523 = vmatpush1.bf16.msra.mxu1 %v4910_v7  ;;  %v5005_v6 = vld [vmem:[#allocation5 + $0x404] ss:$16 sps:$4 sm:$0xff]   ;;  %v109_v7 = vld [vmem:[#allocation2 + $0x10] sm:$0xff] }
  0xb0   :  { %1360 = vmatprep.subr.bf16.mxu0 %v4915_v8  ;;  %1524 = vmatprep.subr.bf16.mxu1 %v4918_v9  ;;  %v5008_v8 = vld [vmem:[#allocation5 + $0x40c] ss:$16 sps:$4 sm:$0xff]   ;;  %v5003_v9 = vld [vmem:[#allocation5 + $0x400] ss:$16 sps:$4 sm:$0xff]  }
  0xb1   :  { %1390 = vmatprep.mubr.bf16.mxu0 %v117_v32  ;;  %1554 = vmatprep.mubr.bf16.mxu1 %v117_v32  ;;  %v5033_v32 = vld [vmem:[#allocation5 + $0x4a0] ss:$16 sps:$4 sm:$0xff]  }
  0xb3   :  { %1361 = vmatpush1.bf16.msra.mxu0 %v4913_v10  ;;  %1525 = vmatpush1.bf16.msra.mxu1 %v4916_v11  ;;  %v116_v10 = vpack.c.bf16 %v109_v7, %v109_v7  ;;  %v5006_v11 = vld [vmem:[#allocation5 + $0x408] ss:$16 sps:$4 sm:$0xff]   ;;  %v5098_v7 = vld [vmem:[#allocation5 + $0x5ec] ss:$16 sps:$4 sm:$0xff]  }
  0xb4   :  { %1362 = vmatprep.subr.bf16.mxu0 %v4921_v12  ;;  %1526 = vmatprep.subr.bf16.mxu1 %v4924_v13  ;;  %v5011_v12 = vld [vmem:[#allocation5 + $0x424] ss:$16 sps:$4 sm:$0xff]   ;;  %v5014_v13 = vld [vmem:[#allocation5 + $0x42c] ss:$16 sps:$4 sm:$0xff]  }
  0xb7   :  { %1363 = vmatpush1.bf16.msra.mxu0 %v4919_v14  ;;  %1527 = vmatpush1.bf16.msra.mxu1 %v4922_v15  ;;  %v112_v14 = vld [vmem:[#allocation2 + $0x28] sm:$0xff] }
  0xb8   :  { %1364 = vmatprep.subr.bf16.mxu0 %v4927_v16  ;;  %1528 = vmatprep.subr.bf16.mxu1 %v4930_v17  ;;  %v119_v15 = vpack.c.bf16 %v112_v14, %v112_v14  ;;  %v5009_v16 = vld [vmem:[#allocation5 + $0x420] ss:$16 sps:$4 sm:$0xff]   ;;  %v5012_v17 = vld [vmem:[#allocation5 + $0x428] ss:$16 sps:$4 sm:$0xff]  }
  0xb9   :  { %v5102_v14 = vld [vmem:[#allocation5 + $0x608] ss:$16 sps:$4 sm:$0xff]  }
  0xbb   :  { %1365 = vmatpush1.bf16.msra.mxu0 %v4925_v18  ;;  %1529 = vmatpush1.bf16.msra.mxu1 %v4928_v19  ;;  %v5017_v18 = vld [vmem:[#allocation5 + $0x444] ss:$16 sps:$4 sm:$0xff]   ;;  %v5020_v19 = vld [vmem:[#allocation5 + $0x44c] ss:$16 sps:$4 sm:$0xff]  }
  0xbc   :  { %1366 = vmatprep.subr.bf16.mxu0 %v4933_v20  ;;  %1530 = vmatprep.subr.bf16.mxu1 %v4936_v21  ;;  %v5015_v20 = vld [vmem:[#allocation5 + $0x440] ss:$16 sps:$4 sm:$0xff]   ;;  %v5018_v21 = vld [vmem:[#allocation5 + $0x448] ss:$16 sps:$4 sm:$0xff]  }
  0xbf   :  { %1367 = vmatpush1.bf16.msra.mxu0 %v4931_v22  ;;  %1531 = vmatpush1.bf16.msra.mxu1 %v4934_v23  ;;  %v5023_v22 = vld [vmem:[#allocation5 + $0x464] ss:$16 sps:$4 sm:$0xff]   ;;  %v5026_v23 = vld [vmem:[#allocation5 + $0x46c] ss:$16 sps:$4 sm:$0xff]  }
  0xc0   :  { %1368 = vmatprep.subr.bf16.mxu0 %v4939_v24  ;;  %1532 = vmatprep.subr.bf16.mxu1 %v4942_v25  ;;  %v5021_v24 = vld [vmem:[#allocation5 + $0x460] ss:$16 sps:$4 sm:$0xff]   ;;  %v5024_v25 = vld [vmem:[#allocation5 + $0x468] ss:$16 sps:$4 sm:$0xff]  }
  0xc3   :  { %1369 = vmatpush1.bf16.msra.mxu0 %v4937_v26  ;;  %1533 = vmatpush1.bf16.msra.mxu1 %v4940_v27  ;;  %v5029_v26 = vld [vmem:[#allocation5 + $0x484] ss:$16 sps:$4 sm:$0xff]   ;;  %v5032_v27 = vld [vmem:[#allocation5 + $0x48c] ss:$16 sps:$4 sm:$0xff]  }
  0xc4   :  { %1370 = vmatprep.subr.bf16.mxu0 %v4945_v28  ;;  %1534 = vmatprep.subr.bf16.mxu1 %v4948_v29  ;;  %v5027_v28 = vld [vmem:[#allocation5 + $0x480] ss:$16 sps:$4 sm:$0xff]   ;;  %v5030_v29 = vld [vmem:[#allocation5 + $0x488] ss:$16 sps:$4 sm:$0xff]  }
  0xc7   :  { %1371 = vmatpush1.bf16.msra.mxu0 %v4943_v31  ;;  %1535 = vmatpush1.bf16.msra.mxu1 %v4946_v33  ;;  %v5038_v31 = vld [vmem:[#allocation5 + $0x4ac] ss:$16 sps:$4 sm:$0xff]   ;;  %v5036_v33 = vld [vmem:[#allocation5 + $0x4a8] ss:$16 sps:$4 sm:$0xff]  }
  0xc8   :  { %1372 = vmatprep.subr.bf16.mxu0 %v4951_v34  ;;  %1536 = vmatprep.subr.bf16.mxu1 %v4954_v35  ;;  %v5041_v34 = vld [vmem:[#allocation5 + $0x4c4] ss:$16 sps:$4 sm:$0xff]   ;;  %v5044_v35 = vld [vmem:[#allocation5 + $0x4cc] ss:$16 sps:$4 sm:$0xff]  }
  0xcb   :  { %1373 = vmatpush1.bf16.msra.mxu0 %v4949_v36  ;;  %1537 = vmatpush1.bf16.msra.mxu1 %v4952_v37  ;;  %v5039_v36 = vld [vmem:[#allocation5 + $0x4c0] ss:$16 sps:$4 sm:$0xff]   ;;  %v5042_v37 = vld [vmem:[#allocation5 + $0x4c8] ss:$16 sps:$4 sm:$0xff]  }
  0xcc   :  { %1374 = vmatprep.subr.bf16.mxu0 %v4957_v38  ;;  %1538 = vmatprep.subr.bf16.mxu1 %v4960_v39  ;;  %v5047_v38 = vld [vmem:[#allocation5 + $0x4e4] ss:$16 sps:$4 sm:$0xff]   ;;  %v5050_v39 = vld [vmem:[#allocation5 + $0x4ec] ss:$16 sps:$4 sm:$0xff]  }
  0xcf   :  { %1375 = vmatpush1.bf16.msra.mxu0 %v4955_v40  ;;  %1539 = vmatpush1.bf16.msra.mxu1 %v4958_v41  ;;  %v5045_v40 = vld [vmem:[#allocation5 + $0x4e0] ss:$16 sps:$4 sm:$0xff]   ;;  %v5048_v41 = vld [vmem:[#allocation5 + $0x4e8] ss:$16 sps:$4 sm:$0xff]  }
  0xd0   :  { %1376 = vmatprep.subr.bf16.mxu0 %v4963_v42  ;;  %1540 = vmatprep.subr.bf16.mxu1 %v4966_v43  ;;  %v5053_v42 = vld [vmem:[#allocation5 + $0x504] ss:$16 sps:$4 sm:$0xff]   ;;  %v5056_v43 = vld [vmem:[#allocation5 + $0x50c] ss:$16 sps:$4 sm:$0xff]  }
  0xd3   :  { %1377 = vmatpush1.bf16.msra.mxu0 %v4961_v44  ;;  %1541 = vmatpush1.bf16.msra.mxu1 %v4964_v45  ;;  %v5051_v44 = vld [vmem:[#allocation5 + $0x500] ss:$16 sps:$4 sm:$0xff]   ;;  %v5054_v45 = vld [vmem:[#allocation5 + $0x508] ss:$16 sps:$4 sm:$0xff]  }
  0xd4   :  { %1378 = vmatprep.subr.bf16.mxu0 %v4969_v46  ;;  %1542 = vmatprep.subr.bf16.mxu1 %v4972_v47  ;;  %v5059_v46 = vld [vmem:[#allocation5 + $0x524] ss:$16 sps:$4 sm:$0xff]   ;;  %v5062_v47 = vld [vmem:[#allocation5 + $0x52c] ss:$16 sps:$4 sm:$0xff]  }
  0xd7   :  { %1379 = vmatpush1.bf16.msra.mxu0 %v4967_v48  ;;  %1543 = vmatpush1.bf16.msra.mxu1 %v4970_v49  ;;  %v5057_v48 = vld [vmem:[#allocation5 + $0x520] ss:$16 sps:$4 sm:$0xff]   ;;  %v5060_v49 = vld [vmem:[#allocation5 + $0x528] ss:$16 sps:$4 sm:$0xff]  }
  0xd8   :  { %1380 = vmatprep.subr.bf16.mxu0 %v4975_v50  ;;  %1544 = vmatprep.subr.bf16.mxu1 %v4978_v51  ;;  %v5065_v50 = vld [vmem:[#allocation5 + $0x544] ss:$16 sps:$4 sm:$0xff]   ;;  %v5068_v51 = vld [vmem:[#allocation5 + $0x54c] ss:$16 sps:$4 sm:$0xff]  }
  0xdb   :  { %1381 = vmatpush1.bf16.msra.mxu0 %v4973_v52  ;;  %1545 = vmatpush1.bf16.msra.mxu1 %v4976_v53  ;;  %v5063_v52 = vld [vmem:[#allocation5 + $0x540] ss:$16 sps:$4 sm:$0xff]   ;;  %v5066_v53 = vld [vmem:[#allocation5 + $0x548] ss:$16 sps:$4 sm:$0xff]  }
  0xdc   :  { %1382 = vmatprep.subr.bf16.mxu0 %v4981_v54  ;;  %1546 = vmatprep.subr.bf16.mxu1 %v4984_v55  ;;  %v5071_v54 = vld [vmem:[#allocation5 + $0x564] ss:$16 sps:$4 sm:$0xff]   ;;  %v5074_v55 = vld [vmem:[#allocation5 + $0x56c] ss:$16 sps:$4 sm:$0xff]  }
  0xdf   :  { %1383 = vmatpush1.bf16.msra.mxu0 %v4979_v56  ;;  %1547 = vmatpush1.bf16.msra.mxu1 %v4982_v57  ;;  %v5069_v56 = vld [vmem:[#allocation5 + $0x560] ss:$16 sps:$4 sm:$0xff]   ;;  %v5072_v57 = vld [vmem:[#allocation5 + $0x568] ss:$16 sps:$4 sm:$0xff]  }
  0xe0   :  { %1384 = vmatprep.subr.bf16.mxu0 %v4987_v58  ;;  %1548 = vmatprep.subr.bf16.mxu1 %v4990_v59  ;;  %v5077_v58 = vld [vmem:[#allocation5 + $0x584] ss:$16 sps:$4 sm:$0xff]   ;;  %v5080_v59 = vld [vmem:[#allocation5 + $0x58c] ss:$16 sps:$4 sm:$0xff]  }
  0xe3   :  { %1385 = vmatpush1.bf16.msra.mxu0 %v4985_v60  ;;  %1549 = vmatpush1.bf16.msra.mxu1 %v4988_v61  ;;  %v5075_v60 = vld [vmem:[#allocation5 + $0x580] ss:$16 sps:$4 sm:$0xff]   ;;  %v5078_v61 = vld [vmem:[#allocation5 + $0x588] ss:$16 sps:$4 sm:$0xff]  }
  0xe4   :  { %1386 = vmatprep.subr.bf16.mxu0 %v4993_v62  ;;  %1550 = vmatprep.subr.bf16.mxu1 %v4996_v63  ;;  %v5083_v62 = vld [vmem:[#allocation5 + $0x5a4] ss:$16 sps:$4 sm:$0xff]   ;;  %v5086_v63 = vld [vmem:[#allocation5 + $0x5ac] ss:$16 sps:$4 sm:$0xff]  }
  0xe7   :  { %1387 = vmatpush1.bf16.msra.mxu0 %v4991_v0  ;;  %1551 = vmatpush1.bf16.msra.mxu1 %v4994_v1  ;;  %v5081_v0 = vld [vmem:[#allocation5 + $0x5a0] ss:$16 sps:$4 sm:$0xff]   ;;  %v5084_v1 = vld [vmem:[#allocation5 + $0x5a8] ss:$16 sps:$4 sm:$0xff]  }
  0xe8   :  { %1388 = vmatprep.subr.bf16.mxu0 %v4999_v2  ;;  %1552 = vmatprep.subr.bf16.mxu1 %v5002_v3  ;;  %v5089_v2 = vld [vmem:[#allocation5 + $0x5c4] ss:$16 sps:$4 sm:$0xff]   ;;  %v5092_v3 = vld [vmem:[#allocation5 + $0x5cc] ss:$16 sps:$4 sm:$0xff]  }
  0xeb   :  { %1389 = vmatpush1.bf16.msra.mxu0 %v4997_v4  ;;  %1553 = vmatpush1.bf16.msra.mxu1 %v5000_v5  ;;  %v5087_v4 = vld [vmem:[#allocation5 + $0x5c0] ss:$16 sps:$4 sm:$0xff]   ;;  %v5090_v5 = vld [vmem:[#allocation5 + $0x5c8] ss:$16 sps:$4 sm:$0xff]  }
  0xec   :  { %1399 = vmatprep.subr.bf16.mxu0 %v5005_v6  ;;  %1563 = vmatprep.subr.bf16.mxu1 %v5008_v8  ;;  %v5095_v6 = vld [vmem:[#allocation5 + $0x5e4] ss:$16 sps:$4 sm:$0xff]   ;;  %v5093_v8 = vld [vmem:[#allocation5 + $0x5e0] ss:$16 sps:$4 sm:$0xff]  }
  0xee   :  { %1391 = vmatmul.mubr.bf16.vlgmr.msra.gmra.mrb[0].mxu0 %v116_v10  ;;  %1555 = vmatmul.mubr.bf16.vlgmr.msra.gmra.mrb[0].mxu1 %v116_v10  ;;  %v111_v10 = vld [vmem:[#allocation2 + $0x20] sm:$0xff] }
  0xef   :  { %1400 = vmatpush1.bf16.msra.mxu0 %v5003_v9  ;;  %1564 = vmatpush1.bf16.msra.mxu1 %v5006_v11  ;;  %v5096_v9 = vld [vmem:[#allocation5 + $0x5e8] ss:$16 sps:$4 sm:$0xff]   ;;  %v5101_v11 = vld [vmem:[#allocation5 + $0x604] ss:$16 sps:$4 sm:$0xff]  }
  0xf0   :  { %1401 = vmatprep.subr.bf16.mxu0 %v5011_v12  ;;  %1565 = vmatprep.subr.bf16.mxu1 %v5014_v13  ;;  %v5104_v12 = vld [vmem:[#allocation5 + $0x60c] ss:$16 sps:$4 sm:$0xff]   ;;  %v5099_v13 = vld [vmem:[#allocation5 + $0x600] ss:$16 sps:$4 sm:$0xff]  }
  0xf1   :  { %1431 = vmatprep.mubr.bf16.mxu0 %v119_v15  ;;  %1595 = vmatprep.mubr.bf16.mxu1 %v119_v15  ;;  %v118_v15 = vpack.c.bf16 %v111_v10, %v111_v10  ;;  %v5186_v10 = vld [vmem:[#allocation7 + $0x1a8] ss:$16 sps:$4 sm:$0xff]  }
  0xf3   :  { %1402 = vmatpush1.bf16.msra.mxu0 %v5009_v16  ;;  %1566 = vmatpush1.bf16.msra.mxu1 %v5012_v17  ;;  %v5107_v16 = vld [vmem:[#allocation7 + $0x4] ss:$16 sps:$4 sm:$0xff]   ;;  %v5110_v17 = vld [vmem:[#allocation7 + $0xc] ss:$16 sps:$4 sm:$0xff]  }
  0xf4   :  { %1403 = vmatprep.subr.bf16.mxu0 %v5017_v18  ;;  %1567 = vmatprep.subr.bf16.mxu1 %v5020_v19  ;;  %v5719_v18 = vmov 0   ;;  %v113_v19 = vld [vmem:[#allocation2 + $0x30] sm:$0xff] }
  0xf7   :  { %1404 = vmatpush1.bf16.msra.mxu0 %v5015_v20  ;;  %1568 = vmatpush1.bf16.msra.mxu1 %v5018_v21  ;;  %v5105_v20 = vld [vmem:[#allocation7] ss:$16 sps:$4 sm:$0xff]   ;;  %v5108_v21 = vld [vmem:[#allocation7 + $0x8] ss:$16 sps:$4 sm:$0xff]  }
  0xf8   :  { %1405 = vmatprep.subr.bf16.mxu0 %v5023_v22  ;;  %1569 = vmatprep.subr.bf16.mxu1 %v5026_v23  ;;  %v120_v22 = vpack.c.bf16 %v113_v19, %v113_v19  ;;  %v5113_v23 = vld [vmem:[#allocation7 + $0x24] ss:$16 sps:$4 sm:$0xff]  }
  0xf9   :  { %v5203_v19 = vld [vmem:[#allocation7 + $0x204] ss:$16 sps:$4 sm:$0xff]  }
  0xfb   :  { %1406 = vmatpush1.bf16.msra.mxu0 %v5021_v24  ;;  %1570 = vmatpush1.bf16.msra.mxu1 %v5024_v25  ;;  %v5116_v24 = vld [vmem:[#allocation7 + $0x2c] ss:$16 sps:$4 sm:$0xff]   ;;  %v5111_v25 = vld [vmem:[#allocation7 + $0x20] ss:$16 sps:$4 sm:$0xff]  }
  0xfc   :  { %1407 = vmatprep.subr.bf16.mxu0 %v5029_v26  ;;  %1571 = vmatprep.subr.bf16.mxu1 %v5032_v27  ;;  %v5114_v26 = vld [vmem:[#allocation7 + $0x28] ss:$16 sps:$4 sm:$0xff]   ;;  %v5119_v27 = vld [vmem:[#allocation7 + $0x44] ss:$16 sps:$4 sm:$0xff]  }
  0xff   :  { %1408 = vmatpush1.bf16.msra.mxu0 %v5027_v28  ;;  %1572 = vmatpush1.bf16.msra.mxu1 %v5030_v29  ;;  %v5122_v28 = vld [vmem:[#allocation7 + $0x4c] ss:$16 sps:$4 sm:$0xff]   ;;  %v5117_v29 = vld [vmem:[#allocation7 + $0x40] ss:$16 sps:$4 sm:$0xff]  }
 0x100   :  { %1409 = vmatprep.subr.bf16.mxu0 %v5035_v30  ;;  %1573 = vmatprep.subr.bf16.mxu1 %v5038_v31  ;;  %v5120_v30 = vld [vmem:[#allocation7 + $0x48] ss:$16 sps:$4 sm:$0xff]   ;;  %v5125_v31 = vld [vmem:[#allocation7 + $0x64] ss:$16 sps:$4 sm:$0xff]  }
 0x103   :  { %1410 = vmatpush1.bf16.msra.mxu0 %v5033_v32  ;;  %1574 = vmatpush1.bf16.msra.mxu1 %v5036_v33  ;;  %v5128_v32 = vld [vmem:[#allocation7 + $0x6c] ss:$16 sps:$4 sm:$0xff]   ;;  %v5123_v33 = vld [vmem:[#allocation7 + $0x60] ss:$16 sps:$4 sm:$0xff]  }
 0x104   :  { %1411 = vmatprep.subr.bf16.mxu0 %v5041_v34  ;;  %1575 = vmatprep.subr.bf16.mxu1 %v5044_v35  ;;  %v5126_v34 = vld [vmem:[#allocation7 + $0x68] ss:$16 sps:$4 sm:$0xff]   ;;  %v5131_v35 = vld [vmem:[#allocation7 + $0x84] ss:$16 sps:$4 sm:$0xff]  }
 0x107   :  { %1412 = vmatpush1.bf16.msra.mxu0 %v5039_v36  ;;  %1576 = vmatpush1.bf16.msra.mxu1 %v5042_v37  ;;  %v5134_v36 = vld [vmem:[#allocation7 + $0x8c] ss:$16 sps:$4 sm:$0xff]   ;;  %v5129_v37 = vld [vmem:[#allocation7 + $0x80] ss:$16 sps:$4 sm:$0xff]  }
 0x108   :  { %1413 = vmatprep.subr.bf16.mxu0 %v5047_v38  ;;  %1577 = vmatprep.subr.bf16.mxu1 %v5050_v39  ;;  %v5132_v38 = vld [vmem:[#allocation7 + $0x88] ss:$16 sps:$4 sm:$0xff]   ;;  %v5137_v39 = vld [vmem:[#allocation7 + $0xa4] ss:$16 sps:$4 sm:$0xff]  }
 0x10b   :  { %1414 = vmatpush1.bf16.msra.mxu0 %v5045_v40  ;;  %1578 = vmatpush1.bf16.msra.mxu1 %v5048_v41  ;;  %v5140_v40 = vld [vmem:[#allocation7 + $0xac] ss:$16 sps:$4 sm:$0xff]   ;;  %v5135_v41 = vld [vmem:[#allocation7 + $0xa0] ss:$16 sps:$4 sm:$0xff]  }
 0x10c   :  { %1415 = vmatprep.subr.bf16.mxu0 %v5053_v42  ;;  %1579 = vmatprep.subr.bf16.mxu1 %v5056_v43  ;;  %v5138_v42 = vld [vmem:[#allocation7 + $0xa8] ss:$16 sps:$4 sm:$0xff]   ;;  %v5143_v43 = vld [vmem:[#allocation7 + $0xc4] ss:$16 sps:$4 sm:$0xff]  }
 0x10f   :  { %1416 = vmatpush1.bf16.msra.mxu0 %v5051_v44  ;;  %1580 = vmatpush1.bf16.msra.mxu1 %v5054_v45  ;;  %v5146_v44 = vld [vmem:[#allocation7 + $0xcc] ss:$16 sps:$4 sm:$0xff]   ;;  %v5141_v45 = vld [vmem:[#allocation7 + $0xc0] ss:$16 sps:$4 sm:$0xff]  }
 0x110   :  { %1417 = vmatprep.subr.bf16.mxu0 %v5059_v46  ;;  %1581 = vmatprep.subr.bf16.mxu1 %v5062_v47  ;;  %v5144_v46 = vld [vmem:[#allocation7 + $0xc8] ss:$16 sps:$4 sm:$0xff]   ;;  %v5149_v47 = vld [vmem:[#allocation7 + $0xe4] ss:$16 sps:$4 sm:$0xff]  }
 0x113   :  { %1418 = vmatpush1.bf16.msra.mxu0 %v5057_v48  ;;  %1582 = vmatpush1.bf16.msra.mxu1 %v5060_v49  ;;  %v5152_v48 = vld [vmem:[#allocation7 + $0xec] ss:$16 sps:$4 sm:$0xff]   ;;  %v5147_v49 = vld [vmem:[#allocation7 + $0xe0] ss:$16 sps:$4 sm:$0xff]  }
 0x114   :  { %1419 = vmatprep.subr.bf16.mxu0 %v5065_v50  ;;  %1583 = vmatprep.subr.bf16.mxu1 %v5068_v51  ;;  %v5150_v50 = vld [vmem:[#allocation7 + $0xe8] ss:$16 sps:$4 sm:$0xff]   ;;  %v5155_v51 = vld [vmem:[#allocation7 + $0x104] ss:$16 sps:$4 sm:$0xff]  }
 0x117   :  { %1420 = vmatpush1.bf16.msra.mxu0 %v5063_v52  ;;  %1584 = vmatpush1.bf16.msra.mxu1 %v5066_v53  ;;  %v5158_v52 = vld [vmem:[#allocation7 + $0x10c] ss:$16 sps:$4 sm:$0xff]   ;;  %v5153_v53 = vld [vmem:[#allocation7 + $0x100] ss:$16 sps:$4 sm:$0xff]  }
 0x118   :  { %1421 = vmatprep.subr.bf16.mxu0 %v5071_v54  ;;  %1585 = vmatprep.subr.bf16.mxu1 %v5074_v55  ;;  %v5156_v54 = vld [vmem:[#allocation7 + $0x108] ss:$16 sps:$4 sm:$0xff]   ;;  %v5161_v55 = vld [vmem:[#allocation7 + $0x124] ss:$16 sps:$4 sm:$0xff]  }
 0x11b   :  { %1422 = vmatpush1.bf16.msra.mxu0 %v5069_v56  ;;  %1586 = vmatpush1.bf16.msra.mxu1 %v5072_v57  ;;  %v5164_v56 = vld [vmem:[#allocation7 + $0x12c] ss:$16 sps:$4 sm:$0xff]   ;;  %v5159_v57 = vld [vmem:[#allocation7 + $0x120] ss:$16 sps:$4 sm:$0xff]  }
 0x11c   :  { %1423 = vmatprep.subr.bf16.mxu0 %v5077_v58  ;;  %1587 = vmatprep.subr.bf16.mxu1 %v5080_v59  ;;  %v5162_v58 = vld [vmem:[#allocation7 + $0x128] ss:$16 sps:$4 sm:$0xff]   ;;  %v5167_v59 = vld [vmem:[#allocation7 + $0x144] ss:$16 sps:$4 sm:$0xff]  }
 0x11f   :  { %1424 = vmatpush1.bf16.msra.mxu0 %v5075_v60  ;;  %1588 = vmatpush1.bf16.msra.mxu1 %v5078_v61  ;;  %v5170_v60 = vld [vmem:[#allocation7 + $0x14c] ss:$16 sps:$4 sm:$0xff]   ;;  %v5165_v61 = vld [vmem:[#allocation7 + $0x140] ss:$16 sps:$4 sm:$0xff]  }
 0x120   :  { %1425 = vmatprep.subr.bf16.mxu0 %v5083_v62  ;;  %1589 = vmatprep.subr.bf16.mxu1 %v5086_v63  ;;  %v5168_v62 = vld [vmem:[#allocation7 + $0x148] ss:$16 sps:$4 sm:$0xff]   ;;  %v5173_v63 = vld [vmem:[#allocation7 + $0x164] ss:$16 sps:$4 sm:$0xff]  }
 0x123   :  { %1426 = vmatpush1.bf16.msra.mxu0 %v5081_v0  ;;  %1590 = vmatpush1.bf16.msra.mxu1 %v5084_v1  ;;  %v5176_v0 = vld [vmem:[#allocation7 + $0x16c] ss:$16 sps:$4 sm:$0xff]   ;;  %v5171_v1 = vld [vmem:[#allocation7 + $0x160] ss:$16 sps:$4 sm:$0xff]  }
 0x124   :  { %1427 = vmatprep.subr.bf16.mxu0 %v5089_v2  ;;  %1591 = vmatprep.subr.bf16.mxu1 %v5092_v3  ;;  %v5174_v2 = vld [vmem:[#allocation7 + $0x168] ss:$16 sps:$4 sm:$0xff]   ;;  %v5179_v3 = vld [vmem:[#allocation7 + $0x184] ss:$16 sps:$4 sm:$0xff]  }
 0x127   :  { %1428 = vmatpush1.bf16.msra.mxu0 %v5087_v4  ;;  %1592 = vmatpush1.bf16.msra.mxu1 %v5090_v5  ;;  %v5182_v4 = vld [vmem:[#allocation7 + $0x18c] ss:$16 sps:$4 sm:$0xff]   ;;  %v5177_v5 = vld [vmem:[#allocation7 + $0x180] ss:$16 sps:$4 sm:$0xff]  }
 0x128   :  { %1429 = vmatprep.subr.bf16.mxu0 %v5095_v6  ;;  %1593 = vmatprep.subr.bf16.mxu1 %v5098_v7  ;;  %v5180_v6 = vld [vmem:[#allocation7 + $0x188] ss:$16 sps:$4 sm:$0xff]   ;;  %v5185_v7 = vld [vmem:[#allocation7 + $0x1a4] ss:$16 sps:$4 sm:$0xff]  }
 0x12b   :  { %1430 = vmatpush1.bf16.msra.mxu0 %v5093_v8  ;;  %1594 = vmatpush1.bf16.msra.mxu1 %v5096_v9  ;;  %v5188_v8 = vld [vmem:[#allocation7 + $0x1ac] ss:$16 sps:$4 sm:$0xff]   ;;  %v5183_v9 = vld [vmem:[#allocation7 + $0x1a0] ss:$16 sps:$4 sm:$0xff]  }
 0x12c   :  { %1440 = vmatprep.subr.bf16.mxu0 %v5101_v11  ;;  %1604 = vmatprep.subr.bf16.mxu1 %v5104_v12  ;;  %v5191_v11 = vld [vmem:[#allocation7 + $0x1c4] ss:$16 sps:$4 sm:$0xff]   ;;  %v5194_v12 = vld [vmem:[#allocation7 + $0x1cc] ss:$16 sps:$4 sm:$0xff]  }
 0x12e   :  { %1432 = vmatmul.mubr.bf16.vlgmr.msra.gmra.mrb[0].mxu0 %v118_v15  ;;  %1596 = vmatmul.mubr.bf16.vlgmr.msra.gmra.mrb[0].mxu1 %v118_v15  ;;  %v5197_v15 = vld [vmem:[#allocation7 + $0x1e4] ss:$16 sps:$4 sm:$0xff]  }
 0x12f   :  { %1441 = vmatpush1.bf16.msra.mxu0 %v5099_v13  ;;  %1605 = vmatpush1.bf16.msra.mxu1 %v5102_v14  ;;  %v5189_v13 = vld [vmem:[#allocation7 + $0x1c0] ss:$16 sps:$4 sm:$0xff]   ;;  %v5192_v14 = vld [vmem:[#allocation7 + $0x1c8] ss:$16 sps:$4 sm:$0xff]  }
 0x130   :  { %1472 = vmatprep.mubr.bf16.mxu0 %v5719_v18  ;;  %1636 = vmatprep.mubr.bf16.mxu1 %v5719_v18  ;;  %v5198_v18 = vld [vmem:[#allocation7 + $0x1e8] ss:$16 sps:$4 sm:$0xff]  }
 0x131   :  { %2437 = vmatprep.subr.bf16.mxu0 %v5107_v16  ;;  %2519 = vmatprep.subr.bf16.mxu1 %v5110_v17  ;;  %v5200_v16 = vld [vmem:[#allocation7 + $0x1ec] ss:$16 sps:$4 sm:$0xff]   ;;  %v5195_v17 = vld [vmem:[#allocation7 + $0x1e0] ss:$16 sps:$4 sm:$0xff]  }
 0x13a   :  { %4413 = vmatmul.mubr.msk.bf16.vlgmr.msra.gmra.mrb[0].mxu0 %vm1313_vm0, %v120_v22  ;;  %4414 = vmatmul.mubr.msk.bf16.vlgmr.msra.gmra.mrb[0].mxu1 %vm1313_vm0, %v120_v22 }
 0x13b   :  { %2438 = vmatpush1.bf16.msra.mxu0 %v5105_v20  ;;  %2520 = vmatpush1.bf16.msra.mxu1 %v5108_v21  ;;  %v5206_v20 = vld [vmem:[#allocation7 + $0x20c] ss:$16 sps:$4 sm:$0xff]   ;;  %v317_v21 = vlaneseq }
 0x13c   :  { %2439 = vmatprep.subr.bf16.mxu0 %v5113_v23  ;;  %2521 = vmatprep.subr.bf16.mxu1 %v5116_v24  ;;  %v5843_v24 = vld [vmem:[#allocation11] sm:$0xff] }
 0x13d   :  { %v5838_v22 = vshrl.u32 %v317_v21, 7 }
 0x13f   :  { %2440 = vmatpush1.bf16.msra.mxu0 %v5111_v25  ;;  %2522 = vmatpush1.bf16.msra.mxu1 %v5114_v26  ;;  %v5841_v23 = vsub.s32 0, %v5838_v22  ;;  %v5845_v25 = vld [vmem:[#allocation11 + $0x8] sm:$0xff]  ;;  %v5847_v26 = vld [vmem:[#allocation11 + $0x18] sm:$0xff] }
 0x140   :  { %2441 = vmatprep.subr.bf16.mxu0 %v5119_v27  ;;  %2523 = vmatprep.subr.bf16.mxu1 %v5122_v28 }
 0x141   :  { %v320_v27 = vrot.slane %v5843_v24, %v5841_v23  ;;  %v324_v28 = vrot.slane %v5845_v25, %v5841_v23 }
 0x143   :  { %2442 = vmatpush1.bf16.msra.mxu0 %v5117_v29  ;;  %2524 = vmatpush1.bf16.msra.mxu1 %v5120_v30  ;;  %v332_v29 = vrot.slane %v5847_v26, %v5841_v23 }
 0x144   :  { %2443 = vmatprep.subr.bf16.mxu0 %v5125_v31  ;;  %2525 = vmatprep.subr.bf16.mxu1 %v5128_v32 }
 0x147   :  { %2444 = vmatpush1.bf16.msra.mxu0 %v5123_v33  ;;  %2526 = vmatpush1.bf16.msra.mxu1 %v5126_v34 }
 0x148   :  { %2445 = vmatprep.subr.bf16.mxu0 %v5131_v35  ;;  %2527 = vmatprep.subr.bf16.mxu1 %v5134_v36 }
 0x14b   :  { %2446 = vmatpush1.bf16.msra.mxu0 %v5129_v37  ;;  %2528 = vmatpush1.bf16.msra.mxu1 %v5132_v38 }
 0x14c   :  { %2447 = vmatprep.subr.bf16.mxu0 %v5137_v39  ;;  %2529 = vmatprep.subr.bf16.mxu1 %v5140_v40 }
 0x14f   :  { %2448 = vmatpush1.bf16.msra.mxu0 %v5135_v41  ;;  %2530 = vmatpush1.bf16.msra.mxu1 %v5138_v42 }
 0x150   :  { %2449 = vmatprep.subr.bf16.mxu0 %v5143_v43  ;;  %2531 = vmatprep.subr.bf16.mxu1 %v5146_v44 }
 0x153   :  { %2450 = vmatpush1.bf16.msra.mxu0 %v5141_v45  ;;  %2532 = vmatpush1.bf16.msra.mxu1 %v5144_v46  ;;  %v5201_v45 = vld [vmem:[#allocation7 + $0x200] ss:$16 sps:$4 sm:$0xff]   ;;  %v5204_v46 = vld [vmem:[#allocation7 + $0x208] ss:$16 sps:$4 sm:$0xff]  }
 0x154   :  { %2451 = vmatprep.subr.bf16.mxu0 %v5149_v47  ;;  %2533 = vmatprep.subr.bf16.mxu1 %v5152_v48  ;;  %v5209_v48 = vld [vmem:[#allocation7 + $0x224] ss:$16 sps:$4 sm:$0xff]  }
 0x157   :  { %2452 = vmatpush1.bf16.msra.mxu0 %v5147_v49  ;;  %2534 = vmatpush1.bf16.msra.mxu1 %v5150_v50  ;;  %v5212_v49 = vld [vmem:[#allocation7 + $0x22c] ss:$16 sps:$4 sm:$0xff]  }
 0x158   :  { %2453 = vmatprep.subr.bf16.mxu0 %v5155_v51  ;;  %2535 = vmatprep.subr.bf16.mxu1 %v5158_v52  ;;  %v5207_v51 = vld [vmem:[#allocation7 + $0x220] ss:$16 sps:$4 sm:$0xff]   ;;  %v5210_v52 = vld [vmem:[#allocation7 + $0x228] ss:$16 sps:$4 sm:$0xff]  }
 0x15b   :  { %2454 = vmatpush1.bf16.msra.mxu0 %v5153_v53  ;;  %2536 = vmatpush1.bf16.msra.mxu1 %v5156_v54  ;;  %v5215_v53 = vld [vmem:[#allocation7 + $0x244] ss:$16 sps:$4 sm:$0xff]   ;;  %v5218_v54 = vld [vmem:[#allocation7 + $0x24c] ss:$16 sps:$4 sm:$0xff]  }
 0x15c   :  { %2455 = vmatprep.subr.bf16.mxu0 %v5161_v55  ;;  %2537 = vmatprep.subr.bf16.mxu1 %v5164_v56  ;;  %v5213_v55 = vld [vmem:[#allocation7 + $0x240] ss:$16 sps:$4 sm:$0xff]   ;;  %v5216_v56 = vld [vmem:[#allocation7 + $0x248] ss:$16 sps:$4 sm:$0xff]  }
 0x15f   :  { %2456 = vmatpush1.bf16.msra.mxu0 %v5159_v57  ;;  %2538 = vmatpush1.bf16.msra.mxu1 %v5162_v58  ;;  %v5221_v57 = vld [vmem:[#allocation7 + $0x264] ss:$16 sps:$4 sm:$0xff]   ;;  %v5224_v58 = vld [vmem:[#allocation7 + $0x26c] ss:$16 sps:$4 sm:$0xff]  }
 0x160   :  { %2457 = vmatprep.subr.bf16.mxu0 %v5167_v59  ;;  %2539 = vmatprep.subr.bf16.mxu1 %v5170_v60  ;;  %v5219_v59 = vld [vmem:[#allocation7 + $0x260] ss:$16 sps:$4 sm:$0xff]   ;;  %v5222_v60 = vld [vmem:[#allocation7 + $0x268] ss:$16 sps:$4 sm:$0xff]  }
 0x163   :  { %2458 = vmatpush1.bf16.msra.mxu0 %v5165_v61  ;;  %2540 = vmatpush1.bf16.msra.mxu1 %v5168_v62  ;;  %v5227_v61 = vld [vmem:[#allocation7 + $0x284] ss:$16 sps:$4 sm:$0xff]   ;;  %v5230_v62 = vld [vmem:[#allocation7 + $0x28c] ss:$16 sps:$4 sm:$0xff]  }
 0x164   :  { %2459 = vmatprep.subr.bf16.mxu0 %v5173_v63  ;;  %2541 = vmatprep.subr.bf16.mxu1 %v5176_v0  ;;  %v5225_v63 = vld [vmem:[#allocation7 + $0x280] ss:$16 sps:$4 sm:$0xff]   ;;  %v5228_v0 = vld [vmem:[#allocation7 + $0x288] ss:$16 sps:$4 sm:$0xff]  }
 0x167   :  { %2460 = vmatpush1.bf16.msra.mxu0 %v5171_v1  ;;  %2542 = vmatpush1.bf16.msra.mxu1 %v5174_v2  ;;  %v5233_v1 = vld [vmem:[#allocation7 + $0x2a4] ss:$16 sps:$4 sm:$0xff]   ;;  %v5236_v2 = vld [vmem:[#allocation7 + $0x2ac] ss:$16 sps:$4 sm:$0xff]  }
 0x168   :  { %2461 = vmatprep.subr.bf16.mxu0 %v5179_v3  ;;  %2543 = vmatprep.subr.bf16.mxu1 %v5182_v4  ;;  %v5231_v3 = vld [vmem:[#allocation7 + $0x2a0] ss:$16 sps:$4 sm:$0xff]   ;;  %v5234_v4 = vld [vmem:[#allocation7 + $0x2a8] ss:$16 sps:$4 sm:$0xff]  }
 0x16b   :  { %2462 = vmatpush1.bf16.msra.mxu0 %v5177_v5  ;;  %2544 = vmatpush1.bf16.msra.mxu1 %v5180_v6  ;;  %v5239_v5 = vld [vmem:[#allocation7 + $0x2c4] ss:$16 sps:$4 sm:$0xff]   ;;  %v5242_v6 = vld [vmem:[#allocation7 + $0x2cc] ss:$16 sps:$4 sm:$0xff]  }
 0x16c   :  { %2463 = vmatprep.subr.bf16.mxu0 %v5185_v7  ;;  %2545 = vmatprep.subr.bf16.mxu1 %v5188_v8  ;;  %v5237_v7 = vld [vmem:[#allocation7 + $0x2c0] ss:$16 sps:$4 sm:$0xff]   ;;  %v5240_v8 = vld [vmem:[#allocation7 + $0x2c8] ss:$16 sps:$4 sm:$0xff]  }
 0x16f   :  { %2464 = vmatpush1.bf16.msra.mxu0 %v5183_v9  ;;  %2546 = vmatpush1.bf16.msra.mxu1 %v5186_v10  ;;  %v5245_v9 = vld [vmem:[#allocation7 + $0x2e4] ss:$16 sps:$4 sm:$0xff]   ;;  %v5248_v10 = vld [vmem:[#allocation7 + $0x2ec] ss:$16 sps:$4 sm:$0xff]  }
 0x170   :  { %2465 = vmatprep.subr.bf16.mxu0 %v5191_v11  ;;  %2547 = vmatprep.subr.bf16.mxu1 %v5194_v12  ;;  %v5243_v11 = vld [vmem:[#allocation7 + $0x2e0] ss:$16 sps:$4 sm:$0xff]   ;;  %v5246_v12 = vld [vmem:[#allocation7 + $0x2e8] ss:$16 sps:$4 sm:$0xff]  }
 0x173   :  { %2466 = vmatpush1.bf16.msra.mxu0 %v5189_v13  ;;  %2548 = vmatpush1.bf16.msra.mxu1 %v5192_v14  ;;  %v5251_v13 = vld [vmem:[#allocation7 + $0x304] ss:$16 sps:$4 sm:$0xff]   ;;  %v5254_v14 = vld [vmem:[#allocation7 + $0x30c] ss:$16 sps:$4 sm:$0xff]  }
 0x174   :  { %2467 = vmatprep.subr.bf16.mxu0 %v5197_v15  ;;  %2549 = vmatprep.subr.bf16.mxu1 %v5200_v16  ;;  %v5249_v15 = vld [vmem:[#allocation7 + $0x300] ss:$16 sps:$4 sm:$0xff]   ;;  %v5252_v16 = vld [vmem:[#allocation7 + $0x308] ss:$16 sps:$4 sm:$0xff]  }
 0x177   :  { %2468 = vmatpush1.bf16.msra.mxu0 %v5195_v17  ;;  %2550 = vmatpush1.bf16.msra.mxu1 %v5198_v18  ;;  %v5257_v17 = vld [vmem:[#allocation7 + $0x324] ss:$16 sps:$4 sm:$0xff]   ;;  %v5260_v18 = vld [vmem:[#allocation7 + $0x32c] ss:$16 sps:$4 sm:$0xff]  }
 0x178   :  { %2478 = vmatprep.subr.bf16.mxu0 %v5203_v19  ;;  %2560 = vmatprep.subr.bf16.mxu1 %v5206_v20  ;;  %v5255_v19 = vld [vmem:[#allocation7 + $0x320] ss:$16 sps:$4 sm:$0xff]   ;;  %v5258_v20 = vld [vmem:[#allocation7 + $0x328] ss:$16 sps:$4 sm:$0xff]  }
 0x20d   :  { %v1474_v30 = vpop.f32.mrb[0].mxu0  ;;  %v5855_v31 = vpop.f32.mrb[0].mxu1 }
 0x20e   :  { %v4747_v32 = vadd.f32 %v1474_v30, %v320_v27  ;;  %v1476_v33 = vpop.f32.mrb[1].mxu0  ;;  %v1640_v34 = vpop.f32.mrb[1].mxu1  ;;  %v5263_v27 = vld [vmem:[#allocation7 + $0x344] ss:$16 sps:$4 sm:$0xff]   ;;  %v5264_v30 = vld [vmem:[#allocation7 + $0x348] ss:$16 sps:$4 sm:$0xff]  }
 0x20f   :  { %v4748_v35 = vadd.f32 %v1476_v33, %v324_v28  ;;  %v4750_v36 = vadd.f32 %v1640_v34, %v332_v29  ;;  %v1478_v37 = vpop.f32.mrb[2].mxu0  ;;  %v1642_v38 = vpop.f32.mrb[2].mxu1  ;;  %v5266_v28 = vld [vmem:[#allocation7 + $0x34c] ss:$16 sps:$4 sm:$0xff]   ;;  %v5261_v29 = vld [vmem:[#allocation7 + $0x340] ss:$16 sps:$4 sm:$0xff]  }
 0x210   :  { %v1645_v39 = vmax.f32 %v4747_v32, 0.0  ;;  %v1479_v40 = vpop.f32.mrb[3].mxu0  ;;  %v1643_v41 = vpop.f32.mrb[3].mxu1  ;;  %v5269_v32 = vld [vmem:[#allocation7 + $0x364] ss:$16 sps:$4 sm:$0xff]  }
 0x211   :  { %v1646_v42 = vmax.f32 %v4748_v35, 0.0  ;;  %v1648_v43 = vmax.f32 %v4750_v36, 0.0  ;;  %v5272_v33 = vld [vmem:[#allocation7 + $0x36c] ss:$16 sps:$4 sm:$0xff]   ;;  %v5267_v34 = vld [vmem:[#allocation7 + $0x360] ss:$16 sps:$4 sm:$0xff]  }
 0x212   :  { %v1649_v47 = vpack.c.bf16 %v1645_v39, %v1645_v39  ;;  %v5270_v35 = vld [vmem:[#allocation7 + $0x368] ss:$16 sps:$4 sm:$0xff]   ;;  %v5275_v36 = vld [vmem:[#allocation7 + $0x384] ss:$16 sps:$4 sm:$0xff]   ;;  %v5278_v37 = vld [vmem:[#allocation7 + $0x38c] ss:$16 sps:$4 sm:$0xff]  }
 0x213   :  { %v1650_v44 = vpack.c.bf16 %v1646_v42, %v1646_v42  ;;  %v1652_v50 = vpack.c.bf16 %v1648_v43, %v1648_v43  ;;  %v5273_v38 = vld [vmem:[#allocation7 + $0x380] ss:$16 sps:$4 sm:$0xff]   ;;  %v5276_v39 = vld [vmem:[#allocation7 + $0x388] ss:$16 sps:$4 sm:$0xff]   ;;  %v5281_v40 = vld [vmem:[#allocation7 + $0x3a4] ss:$16 sps:$4 sm:$0xff]  }
 0x214   :  { %v5284_v41 = vld [vmem:[#allocation7 + $0x3ac] ss:$16 sps:$4 sm:$0xff]   ;;  %v5857_v42 = vld [vmem:[#allocation11 + $0x10] sm:$0xff] }
 0x215   :  { %2469 = vmatprep.mubr.bf16.mxu0 %v1650_v44  ;;  %2551 = vmatprep.mubr.bf16.mxu1 %v1650_v44  ;;  %v5279_v43 = vld [vmem:[#allocation7 + $0x3a0] ss:$16 sps:$4 sm:$0xff]   ;;  %v5282_v44 = vld [vmem:[#allocation7 + $0x3a8] ss:$16 sps:$4 sm:$0xff]  }
 0x216   :  { %2470 = vmatmul.mubr.bf16.vlgmr.msra.gmra.mrb[4].mxu0 %v1649_v47  ;;  %2552 = vmatmul.mubr.bf16.vlgmr.msra.gmra.mrb[4].mxu1 %v1649_v47  ;;  %v5290_v47 = vld [vmem:[#allocation7 + $0x3cc] ss:$16 sps:$4 sm:$0xff]  }
 0x217   :  { %2479 = vmatpush1.bf16.msra.mxu0 %v5201_v45  ;;  %2561 = vmatpush1.bf16.msra.mxu1 %v5204_v46  ;;  %v328_v45 = vrot.slane %v5857_v42, %v5841_v23  ;;  %v5287_v46 = vld [vmem:[#allocation7 + $0x3c4] ss:$16 sps:$4 sm:$0xff]  }
 0x218   :  { %2510 = vmatprep.mubr.bf16.mxu0 %v1652_v50  ;;  %2592 = vmatprep.mubr.bf16.mxu1 %v1652_v50  ;;  %v5299_v23 = vld [vmem:[#allocation8 + $0x4] ss:$16 sps:$4 sm:$0xff]  }
 0x219   :  { %2480 = vmatprep.subr.bf16.mxu0 %v5209_v48  ;;  %2562 = vmatprep.subr.bf16.mxu1 %v5212_v49  ;;  %v5285_v48 = vld [vmem:[#allocation7 + $0x3c0] ss:$16 sps:$4 sm:$0xff]   ;;  %v5288_v49 = vld [vmem:[#allocation7 + $0x3c8] ss:$16 sps:$4 sm:$0xff]   ;;  %v4749_v50 = vadd.f32 %v5855_v31, %v328_v45  ;;  %v5305_v31 = vld [vmem:[#allocation8 + $0x24] ss:$16 sps:$4 sm:$0xff]  }
 0x21a   :  { %v5363_v45 = vld [vmem:[#allocation8 + $0x160] ss:$16 sps:$4 sm:$0xff]  }
 0x21b   :  { %2481 = vmatpush1.bf16.msra.mxu0 %v5207_v51  ;;  %2563 = vmatpush1.bf16.msra.mxu1 %v5210_v52  ;;  %v5293_v51 = vld [vmem:[#allocation7 + $0x3e4] ss:$16 sps:$4 sm:$0xff]   ;;  %v5296_v52 = vld [vmem:[#allocation7 + $0x3ec] ss:$16 sps:$4 sm:$0xff]  }
 0x21c   :  { %2482 = vmatprep.subr.bf16.mxu0 %v5215_v53  ;;  %2564 = vmatprep.subr.bf16.mxu1 %v5218_v54  ;;  %v5291_v53 = vld [vmem:[#allocation7 + $0x3e0] ss:$16 sps:$4 sm:$0xff]   ;;  %v5294_v54 = vld [vmem:[#allocation7 + $0x3e8] ss:$16 sps:$4 sm:$0xff]  }
 0x21f   :  { %2483 = vmatpush1.bf16.msra.mxu0 %v5213_v55  ;;  %2565 = vmatpush1.bf16.msra.mxu1 %v5216_v56  ;;  %v1647_v55 = vmax.f32 %v4749_v50, 0.0  ;;  %v5302_v56 = vld [vmem:[#allocation8 + $0xc] ss:$16 sps:$4 sm:$0xff]   ;;  %v5372_v50 = vld [vmem:[#allocation8 + $0x188] ss:$16 sps:$4 sm:$0xff]  }
 0x220   :  { %2484 = vmatprep.subr.bf16.mxu0 %v5221_v57  ;;  %2566 = vmatprep.subr.bf16.mxu1 %v5224_v58  ;;  %v5297_v57 = vld [vmem:[#allocation8] ss:$16 sps:$4 sm:$0xff]   ;;  %v5300_v58 = vld [vmem:[#allocation8 + $0x8] ss:$16 sps:$4 sm:$0xff]  }
 0x223   :  { %2485 = vmatpush1.bf16.msra.mxu0 %v5219_v59  ;;  %2567 = vmatpush1.bf16.msra.mxu1 %v5222_v60  ;;  %v1651_v59 = vpack.c.bf16 %v1647_v55, %v1647_v55  ;;  %v5308_v60 = vld [vmem:[#allocation8 + $0x2c] ss:$16 sps:$4 sm:$0xff]   ;;  %v5381_v55 = vld [vmem:[#allocation8 + $0x1c0] ss:$16 sps:$4 sm:$0xff]  }
 0x224   :  { %2486 = vmatprep.subr.bf16.mxu0 %v5227_v61  ;;  %2568 = vmatprep.subr.bf16.mxu1 %v5230_v62  ;;  %v5303_v61 = vld [vmem:[#allocation8 + $0x20] ss:$16 sps:$4 sm:$0xff]   ;;  %v5306_v62 = vld [vmem:[#allocation8 + $0x28] ss:$16 sps:$4 sm:$0xff]  }
 0x227   :  { %2487 = vmatpush1.bf16.msra.mxu0 %v5225_v63  ;;  %2569 = vmatpush1.bf16.msra.mxu1 %v5228_v0  ;;  %v5311_v63 = vld [vmem:[#allocation8 + $0x44] ss:$16 sps:$4 sm:$0xff]   ;;  %v5314_v0 = vld [vmem:[#allocation8 + $0x4c] ss:$16 sps:$4 sm:$0xff]  }
 0x228   :  { %2488 = vmatprep.subr.bf16.mxu0 %v5233_v1  ;;  %2570 = vmatprep.subr.bf16.mxu1 %v5236_v2  ;;  %v5309_v1 = vld [vmem:[#allocation8 + $0x40] ss:$16 sps:$4 sm:$0xff]   ;;  %v5312_v2 = vld [vmem:[#allocation8 + $0x48] ss:$16 sps:$4 sm:$0xff]  }
 0x22b   :  { %2489 = vmatpush1.bf16.msra.mxu0 %v5231_v3  ;;  %2571 = vmatpush1.bf16.msra.mxu1 %v5234_v4  ;;  %v5317_v3 = vld [vmem:[#allocation8 + $0x64] ss:$16 sps:$4 sm:$0xff]   ;;  %v5320_v4 = vld [vmem:[#allocation8 + $0x6c] ss:$16 sps:$4 sm:$0xff]  }
 0x22c   :  { %2490 = vmatprep.subr.bf16.mxu0 %v5239_v5  ;;  %2572 = vmatprep.subr.bf16.mxu1 %v5242_v6  ;;  %v5315_v5 = vld [vmem:[#allocation8 + $0x60] ss:$16 sps:$4 sm:$0xff]   ;;  %v5318_v6 = vld [vmem:[#allocation8 + $0x68] ss:$16 sps:$4 sm:$0xff]  }
 0x22f   :  { %2491 = vmatpush1.bf16.msra.mxu0 %v5237_v7  ;;  %2573 = vmatpush1.bf16.msra.mxu1 %v5240_v8  ;;  %v5323_v7 = vld [vmem:[#allocation8 + $0x84] ss:$16 sps:$4 sm:$0xff]   ;;  %v5326_v8 = vld [vmem:[#allocation8 + $0x8c] ss:$16 sps:$4 sm:$0xff]  }
 0x230   :  { %2492 = vmatprep.subr.bf16.mxu0 %v5245_v9  ;;  %2574 = vmatprep.subr.bf16.mxu1 %v5248_v10  ;;  %v5321_v9 = vld [vmem:[#allocation8 + $0x80] ss:$16 sps:$4 sm:$0xff]   ;;  %v5324_v10 = vld [vmem:[#allocation8 + $0x88] ss:$16 sps:$4 sm:$0xff]  }
 0x233   :  { %2493 = vmatpush1.bf16.msra.mxu0 %v5243_v11  ;;  %2575 = vmatpush1.bf16.msra.mxu1 %v5246_v12  ;;  %v5329_v11 = vld [vmem:[#allocation8 + $0xa4] ss:$16 sps:$4 sm:$0xff]   ;;  %v5332_v12 = vld [vmem:[#allocation8 + $0xac] ss:$16 sps:$4 sm:$0xff]  }
 0x234   :  { %2494 = vmatprep.subr.bf16.mxu0 %v5251_v13  ;;  %2576 = vmatprep.subr.bf16.mxu1 %v5254_v14  ;;  %v5327_v13 = vld [vmem:[#allocation8 + $0xa0] ss:$16 sps:$4 sm:$0xff]   ;;  %v5330_v14 = vld [vmem:[#allocation8 + $0xa8] ss:$16 sps:$4 sm:$0xff]  }
 0x237   :  { %2495 = vmatpush1.bf16.msra.mxu0 %v5249_v15  ;;  %2577 = vmatpush1.bf16.msra.mxu1 %v5252_v16  ;;  %v5335_v15 = vld [vmem:[#allocation8 + $0xc4] ss:$16 sps:$4 sm:$0xff]   ;;  %v5338_v16 = vld [vmem:[#allocation8 + $0xcc] ss:$16 sps:$4 sm:$0xff]  }
 0x238   :  { %2496 = vmatprep.subr.bf16.mxu0 %v5257_v17  ;;  %2578 = vmatprep.subr.bf16.mxu1 %v5260_v18  ;;  %v5333_v17 = vld [vmem:[#allocation8 + $0xc0] ss:$16 sps:$4 sm:$0xff]   ;;  %v5336_v18 = vld [vmem:[#allocation8 + $0xc8] ss:$16 sps:$4 sm:$0xff]  }
 0x23b   :  { %2497 = vmatpush1.bf16.msra.mxu0 %v5255_v19  ;;  %2579 = vmatpush1.bf16.msra.mxu1 %v5258_v20  ;;  %v5341_v19 = vld [vmem:[#allocation8 + $0xe4] ss:$16 sps:$4 sm:$0xff]   ;;  %v5344_v20 = vld [vmem:[#allocation8 + $0xec] ss:$16 sps:$4 sm:$0xff]  }
 0x23c   :  { %2498 = vmatprep.subr.bf16.mxu0 %v5263_v27  ;;  %2580 = vmatprep.subr.bf16.mxu1 %v5266_v28  ;;  %v5339_v27 = vld [vmem:[#allocation8 + $0xe0] ss:$16 sps:$4 sm:$0xff]   ;;  %v5342_v28 = vld [vmem:[#allocation8 + $0xe8] ss:$16 sps:$4 sm:$0xff]  }
 0x23f   :  { %2499 = vmatpush1.bf16.msra.mxu0 %v5261_v29  ;;  %2581 = vmatpush1.bf16.msra.mxu1 %v5264_v30  ;;  %v5347_v29 = vld [vmem:[#allocation8 + $0x104] ss:$16 sps:$4 sm:$0xff]   ;;  %v5350_v30 = vld [vmem:[#allocation8 + $0x10c] ss:$16 sps:$4 sm:$0xff]  }
 0x240   :  { %2500 = vmatprep.subr.bf16.mxu0 %v5269_v32  ;;  %2582 = vmatprep.subr.bf16.mxu1 %v5272_v33  ;;  %v5345_v32 = vld [vmem:[#allocation8 + $0x100] ss:$16 sps:$4 sm:$0xff]   ;;  %v5348_v33 = vld [vmem:[#allocation8 + $0x108] ss:$16 sps:$4 sm:$0xff]  }
 0x243   :  { %2501 = vmatpush1.bf16.msra.mxu0 %v5267_v34  ;;  %2583 = vmatpush1.bf16.msra.mxu1 %v5270_v35  ;;  %v5353_v34 = vld [vmem:[#allocation8 + $0x124] ss:$16 sps:$4 sm:$0xff]   ;;  %v5356_v35 = vld [vmem:[#allocation8 + $0x12c] ss:$16 sps:$4 sm:$0xff]  }
 0x244   :  { %2502 = vmatprep.subr.bf16.mxu0 %v5275_v36  ;;  %2584 = vmatprep.subr.bf16.mxu1 %v5278_v37  ;;  %v5351_v36 = vld [vmem:[#allocation8 + $0x120] ss:$16 sps:$4 sm:$0xff]   ;;  %v5354_v37 = vld [vmem:[#allocation8 + $0x128] ss:$16 sps:$4 sm:$0xff]  }
 0x247   :  { %2503 = vmatpush1.bf16.msra.mxu0 %v5273_v38  ;;  %2585 = vmatpush1.bf16.msra.mxu1 %v5276_v39  ;;  %v5359_v38 = vld [vmem:[#allocation8 + $0x144] ss:$16 sps:$4 sm:$0xff]   ;;  %v5362_v39 = vld [vmem:[#allocation8 + $0x14c] ss:$16 sps:$4 sm:$0xff]  }
 0x248   :  { %2504 = vmatprep.subr.bf16.mxu0 %v5281_v40  ;;  %2586 = vmatprep.subr.bf16.mxu1 %v5284_v41  ;;  %v5357_v40 = vld [vmem:[#allocation8 + $0x140] ss:$16 sps:$4 sm:$0xff]   ;;  %v5360_v41 = vld [vmem:[#allocation8 + $0x148] ss:$16 sps:$4 sm:$0xff]  }
 0x24b   :  { %2505 = vmatpush1.bf16.msra.mxu0 %v5279_v43  ;;  %2587 = vmatpush1.bf16.msra.mxu1 %v5282_v44  ;;  %v5365_v43 = vld [vmem:[#allocation8 + $0x164] ss:$16 sps:$4 sm:$0xff]   ;;  %v5368_v44 = vld [vmem:[#allocation8 + $0x16c] ss:$16 sps:$4 sm:$0xff]  }
 0x24c   :  { %2506 = vmatprep.subr.bf16.mxu0 %v5287_v46  ;;  %2588 = vmatprep.subr.bf16.mxu1 %v5290_v47  ;;  %v5366_v46 = vld [vmem:[#allocation8 + $0x168] ss:$16 sps:$4 sm:$0xff]   ;;  %v5371_v47 = vld [vmem:[#allocation8 + $0x184] ss:$16 sps:$4 sm:$0xff]  }
 0x24f   :  { %2507 = vmatpush1.bf16.msra.mxu0 %v5285_v48  ;;  %2589 = vmatpush1.bf16.msra.mxu1 %v5288_v49  ;;  %v5374_v48 = vld [vmem:[#allocation8 + $0x18c] ss:$16 sps:$4 sm:$0xff]   ;;  %v5369_v49 = vld [vmem:[#allocation8 + $0x180] ss:$16 sps:$4 sm:$0xff]  }
 0x250   :  { %2508 = vmatprep.subr.bf16.mxu0 %v5293_v51  ;;  %2590 = vmatprep.subr.bf16.mxu1 %v5296_v52  ;;  %v5377_v51 = vld [vmem:[#allocation8 + $0x1a4] ss:$16 sps:$4 sm:$0xff]   ;;  %v5380_v52 = vld [vmem:[#allocation8 + $0x1ac] ss:$16 sps:$4 sm:$0xff]  }
 0x253   :  { %2509 = vmatpush1.bf16.msra.mxu0 %v5291_v53  ;;  %2591 = vmatpush1.bf16.msra.mxu1 %v5294_v54  ;;  %v5375_v53 = vld [vmem:[#allocation8 + $0x1a0] ss:$16 sps:$4 sm:$0xff]   ;;  %v5378_v54 = vld [vmem:[#allocation8 + $0x1a8] ss:$16 sps:$4 sm:$0xff]  }
 0x254   :  { %3533 = vmatprep.subr.bf16.mxu0 %v5299_v23  ;;  %3615 = vmatprep.subr.bf16.mxu1 %v5302_v56  ;;  %v5383_v23 = vld [vmem:[#allocation8 + $0x1c4] ss:$16 sps:$4 sm:$0xff]   ;;  %v5384_v56 = vld [vmem:[#allocation8 + $0x1c8] ss:$16 sps:$4 sm:$0xff]  }
 0x256   :  { %2511 = vmatmul.mubr.bf16.vlgmr.msra.gmra.mrb[4].mxu0 %v1651_v59  ;;  %2593 = vmatmul.mubr.bf16.vlgmr.msra.gmra.mrb[4].mxu1 %v1651_v59  ;;  %v5392_v59 = vld [vmem:[#allocation8 + $0x1ec] ss:$16 sps:$4 sm:$0xff]  }
 0x257   :  { %3534 = vmatpush1.bf16.msra.mxu0 %v5297_v57  ;;  %3616 = vmatpush1.bf16.msra.mxu1 %v5300_v58  ;;  %v5386_v57 = vld [vmem:[#allocation8 + $0x1cc] ss:$16 sps:$4 sm:$0xff]   ;;  %v5389_v58 = vld [vmem:[#allocation8 + $0x1e4] ss:$16 sps:$4 sm:$0xff]  }
 0x258   :  { %3535 = vmatprep.subr.bf16.mxu0 %v5305_v31  ;;  %3617 = vmatprep.subr.bf16.mxu1 %v5308_v60  ;;  %v5387_v31 = vld [vmem:[#allocation8 + $0x1e0] ss:$16 sps:$4 sm:$0xff]   ;;  %v5390_v60 = vld [vmem:[#allocation8 + $0x1e8] ss:$16 sps:$4 sm:$0xff]  }
 0x25b   :  { %3536 = vmatpush1.bf16.msra.mxu0 %v5303_v61  ;;  %3618 = vmatpush1.bf16.msra.mxu1 %v5306_v62  ;;  %v5395_v61 = vld [vmem:[#allocation8 + $0x204] ss:$16 sps:$4 sm:$0xff]   ;;  %v5398_v62 = vld [vmem:[#allocation8 + $0x20c] ss:$16 sps:$4 sm:$0xff]  }
 0x25c   :  { %3537 = vmatprep.subr.bf16.mxu0 %v5311_v63  ;;  %3619 = vmatprep.subr.bf16.mxu1 %v5314_v0  ;;  %v1783_v63 = vsub.s32 1, %v5838_v22 }
 0x25e   :  { %v1784_v0 = vrot.slane %v5843_v24, %v1783_v63 }
 0x25f   :  { %3538 = vmatpush1.bf16.msra.mxu0 %v5309_v1  ;;  %3620 = vmatpush1.bf16.msra.mxu1 %v5312_v2  ;;  %v1792_v1 = vrot.slane %v5857_v42, %v1783_v63  ;;  %v1788_v2 = vrot.slane %v5845_v25, %v1783_v63 }
 0x260   :  { %3539 = vmatprep.subr.bf16.mxu0 %v5317_v3  ;;  %3621 = vmatprep.subr.bf16.mxu1 %v5320_v4  ;;  %v1796_v3 = vrot.slane %v5847_v26, %v1783_v63 }
 0x263   :  { %3540 = vmatpush1.bf16.msra.mxu0 %v5315_v5  ;;  %3622 = vmatpush1.bf16.msra.mxu1 %v5318_v6 }
 0x264   :  { %3541 = vmatprep.subr.bf16.mxu0 %v5323_v7  ;;  %3623 = vmatprep.subr.bf16.mxu1 %v5326_v8 }
 0x267   :  { %3542 = vmatpush1.bf16.msra.mxu0 %v5321_v9  ;;  %3624 = vmatpush1.bf16.msra.mxu1 %v5324_v10 }
 0x268   :  { %3543 = vmatprep.subr.bf16.mxu0 %v5329_v11  ;;  %3625 = vmatprep.subr.bf16.mxu1 %v5332_v12 }
 0x26b   :  { %3544 = vmatpush1.bf16.msra.mxu0 %v5327_v13  ;;  %3626 = vmatpush1.bf16.msra.mxu1 %v5330_v14 }
 0x26c   :  { %3545 = vmatprep.subr.bf16.mxu0 %v5335_v15  ;;  %3627 = vmatprep.subr.bf16.mxu1 %v5338_v16 }
 0x26f   :  { %3546 = vmatpush1.bf16.msra.mxu0 %v5333_v17  ;;  %3628 = vmatpush1.bf16.msra.mxu1 %v5336_v18 }
 0x270   :  { %3547 = vmatprep.subr.bf16.mxu0 %v5341_v19  ;;  %3629 = vmatprep.subr.bf16.mxu1 %v5344_v20 }
 0x273   :  { %3548 = vmatpush1.bf16.msra.mxu0 %v5339_v27  ;;  %3630 = vmatpush1.bf16.msra.mxu1 %v5342_v28 }
 0x274   :  { %3549 = vmatprep.subr.bf16.mxu0 %v5347_v29  ;;  %3631 = vmatprep.subr.bf16.mxu1 %v5350_v30 }
 0x277   :  { %3550 = vmatpush1.bf16.msra.mxu0 %v5345_v32  ;;  %3632 = vmatpush1.bf16.msra.mxu1 %v5348_v33 }
 0x278   :  { %3551 = vmatprep.subr.bf16.mxu0 %v5353_v34  ;;  %3633 = vmatprep.subr.bf16.mxu1 %v5356_v35 }
 0x27b   :  { %3552 = vmatpush1.bf16.msra.mxu0 %v5351_v36  ;;  %3634 = vmatpush1.bf16.msra.mxu1 %v5354_v37 }
 0x27c   :  { %3553 = vmatprep.subr.bf16.mxu0 %v5359_v38  ;;  %3635 = vmatprep.subr.bf16.mxu1 %v5362_v39 }
 0x27f   :  { %3554 = vmatpush1.bf16.msra.mxu0 %v5357_v40  ;;  %3636 = vmatpush1.bf16.msra.mxu1 %v5360_v41 }
 0x280   :  { %3555 = vmatprep.subr.bf16.mxu0 %v5365_v43  ;;  %3637 = vmatprep.subr.bf16.mxu1 %v5368_v44 }
 0x283   :  { %3556 = vmatpush1.bf16.msra.mxu0 %v5363_v45  ;;  %3638 = vmatpush1.bf16.msra.mxu1 %v5366_v46 }
 0x284   :  { %3557 = vmatprep.subr.bf16.mxu0 %v5371_v47  ;;  %3639 = vmatprep.subr.bf16.mxu1 %v5374_v48 }
 0x287   :  { %3558 = vmatpush1.bf16.msra.mxu0 %v5369_v49  ;;  %3640 = vmatpush1.bf16.msra.mxu1 %v5372_v50 }
 0x288   :  { %3559 = vmatprep.subr.bf16.mxu0 %v5377_v51  ;;  %3641 = vmatprep.subr.bf16.mxu1 %v5380_v52 }
 0x28b   :  { %3560 = vmatpush1.bf16.msra.mxu0 %v5375_v53  ;;  %3642 = vmatpush1.bf16.msra.mxu1 %v5378_v54 }
 0x28c   :  { %3561 = vmatprep.subr.bf16.mxu0 %v5383_v23  ;;  %3643 = vmatprep.subr.bf16.mxu1 %v5386_v57 }
 0x28f   :  { %3562 = vmatpush1.bf16.msra.mxu0 %v5381_v55  ;;  %3644 = vmatpush1.bf16.msra.mxu1 %v5384_v56 }
 0x290   :  { %3563 = vmatprep.subr.bf16.mxu0 %v5389_v58  ;;  %3645 = vmatprep.subr.bf16.mxu1 %v5392_v59 }
 0x293   :  { %3564 = vmatpush1.bf16.msra.mxu0 %v5387_v31  ;;  %3646 = vmatpush1.bf16.msra.mxu1 %v5390_v60 }
 0x294   :  { %3574 = vmatprep.subr.bf16.mxu0 %v5395_v61  ;;  %3656 = vmatprep.subr.bf16.mxu1 %v5398_v62 }
 0x329   :  { %v2512_v4 = vpop.f32.mrb[4].mxu0  ;;  %v2594_v5 = vpop.f32.mrb[4].mxu1 }
 0x32a   :  { %v4751_v6 = vadd.f32 %v2512_v4, %v1784_v0  ;;  %v4753_v7 = vadd.f32 %v2594_v5, %v1792_v1  ;;  %v2514_v8 = vpop.f32.mrb[5].mxu0  ;;  %v2596_v9 = vpop.f32.mrb[5].mxu1 }
 0x32b   :  { %v4752_v10 = vadd.f32 %v2514_v8, %v1788_v2  ;;  %v4754_v11 = vadd.f32 %v2596_v9, %v1796_v3  ;;  %v2516_v12 = vpop.f32.mrb[6].mxu0  ;;  %v2598_v13 = vpop.f32.mrb[6].mxu1 }
 0x32c   :  { %v5867_v14 = vmax.f32 %v4751_v6, 0.0  ;;  %v5869_v15 = vmax.f32 %v4753_v7, 0.0  ;;  %v2517_v16 = vpop.f32.mrb[7].mxu0  ;;  %v2599_v17 = vpop.f32.mrb[7].mxu1 }
 0x32d   :  { %v5871_v18 = vmax.f32 %v4752_v10, 0.0  ;;  %v5873_v19 = vmax.f32 %v4754_v11, 0.0 }
 0x32e   :  { %v2605_v20 = vrot.slane %v5867_v14, 4  ;;  %v2633_v27 = vmul.f32 %v5867_v14, %v5867_v14  ;;  %v2617_v28 = vrot.slane %v5869_v15, 4  ;;  %v2635_v29 = vmul.f32 %v5869_v15, %v5869_v15 }
 0x32f   :  { %v2611_v30 = vrot.slane %v5871_v18, 4  ;;  %v2634_v32 = vmul.f32 %v5871_v18, %v5871_v18  ;;  %v2623_v33 = vrot.slane %v5873_v19, 4  ;;  %v2636_v34 = vmul.f32 %v5873_v19, %v5873_v19 }
 0x330   :  { %v2606_v35 = vadd.f32 %v2605_v20, %v5867_v14  ;;  %v2637_v36 = vrot.slane %v2633_v27, 4  ;;  %v2618_v37 = vadd.f32 %v2617_v28, %v5869_v15  ;;  %v2649_v38 = vrot.slane %v2635_v29, 4 }
 0x331   :  { %v2612_v39 = vadd.f32 %v2611_v30, %v5871_v18  ;;  %v2643_v40 = vrot.slane %v2634_v32, 4  ;;  %v2624_v41 = vadd.f32 %v2623_v33, %v5873_v19  ;;  %v2655_v43 = vrot.slane %v2636_v34, 4 }
 0x332   :  { %v2607_v44 = vrot.slane %v2606_v35, 2  ;;  %v2638_v45 = vadd.f32 %v2637_v36, %v2633_v27  ;;  %v2619_v46 = vrot.slane %v2618_v37, 2  ;;  %v2650_v47 = vadd.f32 %v2649_v38, %v2635_v29 }
 0x333   :  { %v2613_v48 = vrot.slane %v2612_v39, 2  ;;  %v2644_v49 = vadd.f32 %v2643_v40, %v2634_v32  ;;  %v2625_v50 = vrot.slane %v2624_v41, 2  ;;  %v2656_v51 = vadd.f32 %v2655_v43, %v2636_v34 }
 0x334   :  { %v2608_v52 = vadd.f32 %v2607_v44, %v2606_v35  ;;  %v2639_v53 = vrot.slane %v2638_v45, 2  ;;  %v2620_v54 = vadd.f32 %v2619_v46, %v2618_v37  ;;  %v2651_v55 = vrot.slane %v2650_v47, 2 }
 0x335   :  { %v2614_v23 = vadd.f32 %v2613_v48, %v2612_v39  ;;  %v2645_v56 = vrot.slane %v2644_v49, 2  ;;  %v2626_v57 = vadd.f32 %v2625_v50, %v2624_v41  ;;  %v2657_v58 = vrot.slane %v2656_v51, 2 }
 0x336   :  { %v2609_v59 = vrot.slane %v2608_v52, 1  ;;  %v2640_v31 = vadd.f32 %v2639_v53, %v2638_v45  ;;  %v2621_v60 = vrot.slane %v2620_v54, 1  ;;  %v2652_v61 = vadd.f32 %v2651_v55, %v2650_v47 }
 0x337   :  { %v2615_v62 = vrot.slane %v2614_v23, 1  ;;  %v2646_v63 = vadd.f32 %v2645_v56, %v2644_v49  ;;  %v2627_v0 = vrot.slane %v2626_v57, 1  ;;  %v2658_v1 = vadd.f32 %v2657_v58, %v2656_v51 }
 0x338   :  { %v2610_v2 = vadd.f32 %v2609_v59, %v2608_v52  ;;  %v2641_v3 = vrot.slane %v2640_v31, 1  ;;  %v2622_v4 = vadd.f32 %v2621_v60, %v2620_v54  ;;  %v2653_v5 = vrot.slane %v2652_v61, 1 }
 0x339   :  { %v2616_v6 = vadd.f32 %v2615_v62, %v2614_v23  ;;  %v2647_v7 = vrot.slane %v2646_v63, 1  ;;  %v2628_v8 = vadd.f32 %v2627_v0, %v2626_v57  ;;  %v2659_v9 = vrot.slane %v2658_v1, 1 }
 0x33a   :  { %v2629_v10 = vmul.f32 0.125, %v2610_v2  ;;  %v2642_v11 = vadd.f32 %v2641_v3, %v2640_v31  ;;  %v2631_v12 = vmul.f32 0.125, %v2622_v4  ;;  %v2654_v13 = vadd.f32 %v2653_v5, %v2652_v61 }
 0x33b   :  { %v2648_v16 = vadd.f32 %v2647_v7, %v2646_v63  ;;  %v2660_v17 = vadd.f32 %v2659_v9, %v2658_v1  ;;  %v2630_v20 = vmul.f32 0.125, %v2616_v6  ;;  %v2632_v27 = vmul.f32 0.125, %v2628_v8 }
 0x33c   :  { %v2661_v28 = vmul.f32 0.125, %v2642_v11  ;;  %v2665_v29 = vmul.f32 %v2629_v10, %v2629_v10  ;;  %v2663_v30 = vmul.f32 0.125, %v2654_v13  ;;  %v2667_v32 = vmul.f32 %v2631_v12, %v2631_v12 }
 0x33d   :  { %v2662_v33 = vmul.f32 0.125, %v2648_v16  ;;  %v2664_v34 = vmul.f32 0.125, %v2660_v17  ;;  %v2666_v35 = vmul.f32 %v2630_v20, %v2630_v20  ;;  %v2668_v36 = vmul.f32 %v2632_v27, %v2632_v27 }
 0x33e   :  { %v2669_v37 = vsub.f32 %v2661_v28, %v2665_v29  ;;  %v2671_v38 = vsub.f32 %v2663_v30, %v2667_v32  ;;  %v2707_v47 = vsub.s32 2, %v5838_v22  ;;  %v2727_v58 = vsub.s32 3, %v5838_v22  ;;  %v5399_v29 = vld [vmem:[#allocation8 + $0x220] ss:$16 sps:$4 sm:$0xff]   ;;  %v5407_v30 = vld [vmem:[#allocation8 + $0x244] ss:$16 sps:$4 sm:$0xff]  }
 0x33f   :  { %v2670_v39 = vsub.f32 %v2662_v33, %v2666_v35  ;;  %v2672_v40 = vsub.f32 %v2664_v34, %v2668_v36  ;;  %v5410_v32 = vld [vmem:[#allocation8 + $0x24c] ss:$16 sps:$4 sm:$0xff]   ;;  %v5405_v33 = vld [vmem:[#allocation8 + $0x240] ss:$16 sps:$4 sm:$0xff]   ;;  %v5408_v34 = vld [vmem:[#allocation8 + $0x248] ss:$16 sps:$4 sm:$0xff]  }
 0x340   :  { %v2673_v41 = vadd.f32 1e-05, %v2669_v37  ;;  %v2675_v43 = vadd.f32 1e-05, %v2671_v38  ;;  %v5413_v35 = vld [vmem:[#allocation8 + $0x264] ss:$16 sps:$4 sm:$0xff]  }
 0x341   :  { %v2674_v44 = vadd.f32 1e-05, %v2670_v39  ;;  %v2676_v45 = vadd.f32 1e-05, %v2672_v40  ;;  %v5416_v36 = vld [vmem:[#allocation8 + $0x26c] ss:$16 sps:$4 sm:$0xff]  }
 0x342   :  { %5521 = vrsqrt.f32 %v2673_v41  ;;  %v5411_v37 = vld [vmem:[#allocation8 + $0x260] ss:$16 sps:$4 sm:$0xff]   ;;  %v5414_v38 = vld [vmem:[#allocation8 + $0x268] ss:$16 sps:$4 sm:$0xff]   ;;  %v5419_v39 = vld [vmem:[#allocation8 + $0x284] ss:$16 sps:$4 sm:$0xff]  }
 0x343   :  { %5523 = vrsqrt.f32 %v2675_v43  ;;  %v5422_v40 = vld [vmem:[#allocation8 + $0x28c] ss:$16 sps:$4 sm:$0xff]   ;;  %v5417_v41 = vld [vmem:[#allocation8 + $0x280] ss:$16 sps:$4 sm:$0xff]   ;;  %v5420_v43 = vld [vmem:[#allocation8 + $0x288] ss:$16 sps:$4 sm:$0xff]  }
 0x344   :  { %5525 = vrsqrt.f32 %v2674_v44  ;;  %v5425_v44 = vld [vmem:[#allocation8 + $0x2a4] ss:$16 sps:$4 sm:$0xff]  }
 0x345   :  { %5527 = vrsqrt.f32 %v2676_v45  ;;  %v5428_v45 = vld [vmem:[#allocation8 + $0x2ac] ss:$16 sps:$4 sm:$0xff]  }
 0x34c   :  { %v5522_v46 = vpop.eup %5521 }
 0x34d   :  { %v5524_v48 = vpop.eup %5523  ;;  %v2681_v49 = vmul.f32 %v5522_v46, %v5843_v24  ;;  %v5423_v46 = vld [vmem:[#allocation8 + $0x2a0] ss:$16 sps:$4 sm:$0xff]  }
 0x34e   :  { %v5526_v50 = vpop.eup %5525  ;;  %v2683_v51 = vmul.f32 %v5524_v48, %v5857_v42  ;;  %v5431_v48 = vld [vmem:[#allocation8 + $0x2c4] ss:$16 sps:$4 sm:$0xff]  }
 0x34f   :  { %v5528_v52 = vpop.eup %5527  ;;  %v2682_v53 = vmul.f32 %v5526_v50, %v5845_v25  ;;  %v2685_v54 = vmul.f32 %v2681_v49, %v2629_v10  ;;  %v2708_v31 = vrot.slane %v2681_v49, %v2707_v47  ;;  %v5434_v49 = vld [vmem:[#allocation8 + $0x2cc] ss:$16 sps:$4 sm:$0xff]   ;;  %v5429_v50 = vld [vmem:[#allocation8 + $0x2c0] ss:$16 sps:$4 sm:$0xff]  }
 0x350   :  { %v2716_v55 = vrot.slane %v2683_v51, %v2707_v47  ;;  %v2684_v23 = vmul.f32 %v5528_v52, %v5847_v26  ;;  %v2687_v56 = vmul.f32 %v2683_v51, %v2631_v12  ;;  %v5432_v51 = vld [vmem:[#allocation8 + $0x2c8] ss:$16 sps:$4 sm:$0xff]   ;;  %v5437_v52 = vld [vmem:[#allocation8 + $0x2e4] ss:$16 sps:$4 sm:$0xff]  }
 0x351   :  { %v2686_v57 = vmul.f32 %v2682_v53, %v2630_v20  ;;  %v2693_v59 = vrot.slane %v2685_v54, 7  ;;  %v2712_v0 = vrot.slane %v2682_v53, %v2707_v47  ;;  %v2721_v7 = vmul.f32 %v2708_v31, %v5867_v14  ;;  %v5401_v14 = vld [vmem:[#allocation8 + $0x224] ss:$16 sps:$4 sm:$0xff]   ;;  %v5440_v53 = vld [vmem:[#allocation8 + $0x2ec] ss:$16 sps:$4 sm:$0xff]  }
 0x352   :  { %v2723_v60 = vmul.f32 %v2716_v55, %v5869_v15  ;;  %v2688_v61 = vmul.f32 %v2684_v23, %v2632_v27  ;;  %v2695_v62 = vrot.slane %v2687_v56, 7  ;;  %v2720_v3 = vrot.slane %v2684_v23, %v2707_v47  ;;  %v5393_v27 = vld [vmem:[#allocation8 + $0x200] ss:$16 sps:$4 sm:$0xff]   ;;  %v5426_v47 = vld [vmem:[#allocation8 + $0x2a8] ss:$16 sps:$4 sm:$0xff]  }
 0x353   :  { %v2694_v63 = vrot.slane %v2686_v57, 7  ;;  %v2701_v1 = vsub.f32 %v5843_v24, %v2693_v59  ;;  %v2722_v15 = vmul.f32 %v2712_v0, %v5871_v18  ;;  %v5435_v54 = vld [vmem:[#allocation8 + $0x2e0] ss:$16 sps:$4 sm:$0xff]   ;;  %v5438_v55 = vld [vmem:[#allocation8 + $0x2e8] ss:$16 sps:$4 sm:$0xff]  }
 0x354   :  { %v2696_v2 = vrot.slane %v2688_v61, 7  ;;  %v2703_v4 = vsub.f32 %v5857_v42, %v2695_v62  ;;  %v2724_v12 = vmul.f32 %v2720_v3, %v5873_v19  ;;  %v5402_v19 = vld [vmem:[#allocation8 + $0x228] ss:$16 sps:$4 sm:$0xff]   ;;  %v5443_v23 = vld [vmem:[#allocation8 + $0x304] ss:$16 sps:$4 sm:$0xff]  }
 0x355   :  { %v2702_v5 = vsub.f32 %v5845_v25, %v2694_v63  ;;  %v2728_v6 = vrot.slane %v2701_v1, %v2727_v58  ;;  %v5396_v25 = vld [vmem:[#allocation8 + $0x208] ss:$16 sps:$4 sm:$0xff]   ;;  %v5446_v56 = vld [vmem:[#allocation8 + $0x30c] ss:$16 sps:$4 sm:$0xff]   ;;  %v5441_v57 = vld [vmem:[#allocation8 + $0x300] ss:$16 sps:$4 sm:$0xff]  }
 0x356   :  { %v2704_v8 = vsub.f32 %v5847_v26, %v2696_v2  ;;  %v2736_v9 = vrot.slane %v2703_v4, %v2727_v58  ;;  %v5404_v26 = vld [vmem:[#allocation8 + $0x22c] ss:$16 sps:$4 sm:$0xff]   ;;  %v5449_v59 = vld [vmem:[#allocation8 + $0x324] ss:$16 sps:$4 sm:$0xff]   ;;  %v5450_v61 = vld [vmem:[#allocation8 + $0x328] ss:$16 sps:$4 sm:$0xff]  }
 0x357   :  { %v2732_v10 = vrot.slane %v2702_v5, %v2727_v58  ;;  %v2741_v11 = vadd.f32 %v2728_v6, %v2721_v7  ;;  %v5452_v31 = vld [vmem:[#allocation8 + $0x32c] ss:$16 sps:$4 sm:$0xff]   ;;  %v5455_v62 = vld [vmem:[#allocation8 + $0x344] ss:$16 sps:$4 sm:$0xff]   ;;  %v5453_v0 = vld [vmem:[#allocation8 + $0x340] ss:$16 sps:$4 sm:$0xff]  }
 0x358   :  { %v2740_v13 = vrot.slane %v2704_v8, %v2727_v58  ;;  %v5905_v24 = vadd.f32 %v2736_v9, %v2723_v60  ;;  %v5444_v58 = vld [vmem:[#allocation8 + $0x308] ss:$16 sps:$4 sm:$0xff]   ;;  %v5447_v60 = vld [vmem:[#allocation8 + $0x320] ss:$16 sps:$4 sm:$0xff]   ;;  %v5458_v63 = vld [vmem:[#allocation8 + $0x34c] ss:$16 sps:$4 sm:$0xff]  }
 0x359   :  { %v2742_v16 = vadd.f32 %v2732_v10, %v2722_v15  ;;  %v2745_v28 = vpack.c.bf16 %v2741_v11, %v2741_v11  ;;  %v5456_v1 = vld [vmem:[#allocation8 + $0x348] ss:$16 sps:$4 sm:$0xff]   ;;  %v5461_v2 = vld [vmem:[#allocation8 + $0x364] ss:$16 sps:$4 sm:$0xff]   ;;  %v5464_v3 = vld [vmem:[#allocation8 + $0x36c] ss:$16 sps:$4 sm:$0xff]  }
 0x35a   :  { %v2744_v17 = vadd.f32 %v2740_v13, %v2724_v12  ;;  %v5459_v4 = vld [vmem:[#allocation8 + $0x360] ss:$16 sps:$4 sm:$0xff]   ;;  %v5462_v5 = vld [vmem:[#allocation8 + $0x368] ss:$16 sps:$4 sm:$0xff]   ;;  %v5467_v6 = vld [vmem:[#allocation8 + $0x384] ss:$16 sps:$4 sm:$0xff]  }
 0x35b   :  { %v2746_v20 = vpack.c.bf16 %v2742_v16, %v2742_v16  ;;  %v5470_v7 = vld [vmem:[#allocation8 + $0x38c] ss:$16 sps:$4 sm:$0xff]   ;;  %v5465_v8 = vld [vmem:[#allocation8 + $0x380] ss:$16 sps:$4 sm:$0xff]   ;;  %v5468_v9 = vld [vmem:[#allocation8 + $0x388] ss:$16 sps:$4 sm:$0xff]  }
 0x35c   :  { %v2748_v18 = vpack.c.bf16 %v2744_v17, %v2744_v17  ;;  %v5473_v15 = vld [vmem:[#allocation8 + $0x3a4] ss:$16 sps:$4 sm:$0xff]   ;;  %v5476_v10 = vld [vmem:[#allocation8 + $0x3ac] ss:$16 sps:$4 sm:$0xff]   ;;  %v5471_v11 = vld [vmem:[#allocation8 + $0x3a0] ss:$16 sps:$4 sm:$0xff]  }
 0x35d   :  { %3565 = vmatprep.mubr.bf16.mxu0 %v2746_v20  ;;  %3647 = vmatprep.mubr.bf16.mxu1 %v2746_v20  ;;  %v5474_v12 = vld [vmem:[#allocation8 + $0x3a8] ss:$16 sps:$4 sm:$0xff]   ;;  %v5479_v13 = vld [vmem:[#allocation8 + $0x3c4] ss:$16 sps:$4 sm:$0xff]   ;;  %v5482_v16 = vld [vmem:[#allocation8 + $0x3cc] ss:$16 sps:$4 sm:$0xff]  }
 0x35e   :  { %3566 = vmatmul.mubr.bf16.vlgmr.msra.gmra.mrb[8].mxu0 %v2745_v28  ;;  %3648 = vmatmul.mubr.bf16.vlgmr.msra.gmra.mrb[8].mxu1 %v2745_v28  ;;  %v5477_v17 = vld [vmem:[#allocation8 + $0x3c0] ss:$16 sps:$4 sm:$0xff]   ;;  %v5480_v20 = vld [vmem:[#allocation8 + $0x3c8] ss:$16 sps:$4 sm:$0xff]  }
 0x35f   :  { %3575 = vmatpush1.bf16.msra.mxu0 %v5393_v27  ;;  %3657 = vmatpush1.bf16.msra.mxu1 %v5396_v25  ;;  %v5485_v27 = vld [vmem:[#allocation8 + $0x3e4] ss:$16 sps:$4 sm:$0xff]   ;;  %v5488_v25 = vld [vmem:[#allocation8 + $0x3ec] ss:$16 sps:$4 sm:$0xff]   ;;  %v5483_v28 = vld [vmem:[#allocation8 + $0x3e0] ss:$16 sps:$4 sm:$0xff]  }
 0x360   :  { %3606 = vmatprep.mubr.bf16.mxu0 %v2748_v18  ;;  %3688 = vmatprep.mubr.bf16.mxu1 %v2748_v18  ;;  %v5489_v18 = vld [vmem:[#allocation10 + $0x40] sm:$0xff]  }
 0x361   :  { %3576 = vmatprep.subr.bf16.mxu0 %v5401_v14  ;;  %3658 = vmatprep.subr.bf16.mxu1 %v5404_v26  ;;  %v5486_v14 = vld [vmem:[#allocation8 + $0x3e8] ss:$16 sps:$4 sm:$0xff]   ;;  %v2747_v26 = vpack.c.bf16 %v5905_v24, %v5905_v24  ;;  %v5498_v24 = vld [vmem:[#allocation10 + $0xd0] sm:$0xff]  }
 0x363   :  { %3577 = vmatpush1.bf16.msra.mxu0 %v5399_v29  ;;  %3659 = vmatpush1.bf16.msra.mxu1 %v5402_v19  ;;  %v5490_v29 = vld [vmem:[#allocation10 + $0xc0] sm:$0xff]  }
 0x364   :  { %3578 = vmatprep.subr.bf16.mxu0 %v5407_v30  ;;  %3660 = vmatprep.subr.bf16.mxu1 %v5410_v32  ;;  %v5491_v19 = vld [vmem:[#allocation10] sm:$0xff]   ;;  %v5493_v32 = vld [vmem:[#allocation10 + $0x48] sm:$0xff]  }
 0x365   :  { %v5492_v30 = vld [vmem:[#allocation10 + $0x80] sm:$0xff]  }
 0x367   :  { %3579 = vmatpush1.bf16.msra.mxu0 %v5405_v33  ;;  %3661 = vmatpush1.bf16.msra.mxu1 %v5408_v34  ;;  %v5494_v33 = vld [vmem:[#allocation10 + $0xc8] sm:$0xff]  }
 0x368   :  { %3580 = vmatprep.subr.bf16.mxu0 %v5413_v35  ;;  %3662 = vmatprep.subr.bf16.mxu1 %v5416_v36  ;;  %v5495_v34 = vld [vmem:[#allocation10 + $0x8] sm:$0xff]   ;;  %v5497_v36 = vld [vmem:[#allocation10 + $0x50] sm:$0xff]  }
 0x369   :  { %v5496_v35 = vld [vmem:[#allocation10 + $0x88] sm:$0xff]  }
 0x36b   :  { %3581 = vmatpush1.bf16.msra.mxu0 %v5411_v37  ;;  %3663 = vmatpush1.bf16.msra.mxu1 %v5414_v38  ;;  %v5499_v37 = vld [vmem:[#allocation10 + $0x10] sm:$0xff]  }
 0x36c   :  { %3582 = vmatprep.subr.bf16.mxu0 %v5419_v39  ;;  %3664 = vmatprep.subr.bf16.mxu1 %v5422_v40  ;;  %v5500_v38 = vld [vmem:[#allocation10 + $0x90] sm:$0xff]   ;;  %v5501_v39 = vld [vmem:[#allocation10 + $0x58] sm:$0xff]  }
 0x36d   :  { %v5502_v40 = vld [vmem:[#allocation10 + $0xd8] sm:$0xff]  }
 0x36f   :  { %3583 = vmatpush1.bf16.msra.mxu0 %v5417_v41  ;;  %3665 = vmatpush1.bf16.msra.mxu1 %v5420_v43  ;;  %v5503_v41 = vld [vmem:[#allocation10 + $0x18] sm:$0xff]  }
 0x370   :  { %3584 = vmatprep.subr.bf16.mxu0 %v5425_v44  ;;  %3666 = vmatprep.subr.bf16.mxu1 %v5428_v45  ;;  %v5504_v43 = vld [vmem:[#allocation10 + $0x98] sm:$0xff]   ;;  %v5505_v44 = vld [vmem:[#allocation10 + $0x60] sm:$0xff]  }
 0x371   :  { %v5506_v45 = vld [vmem:[#allocation10 + $0xe0] sm:$0xff]  }
 0x373   :  { %3585 = vmatpush1.bf16.msra.mxu0 %v5423_v46  ;;  %3667 = vmatpush1.bf16.msra.mxu1 %v5426_v47  ;;  %v5507_v46 = vld [vmem:[#allocation10 + $0x20] sm:$0xff]  }
 0x374   :  { %3586 = vmatprep.subr.bf16.mxu0 %v5431_v48  ;;  %3668 = vmatprep.subr.bf16.mxu1 %v5434_v49  ;;  %v5508_v47 = vld [vmem:[#allocation10 + $0xa0] sm:$0xff]   ;;  %v5509_v48 = vld [vmem:[#allocation10 + $0x68] sm:$0xff]  }
 0x375   :  { %v5510_v49 = vld [vmem:[#allocation10 + $0xe8] sm:$0xff]  }
 0x377   :  { %3587 = vmatpush1.bf16.msra.mxu0 %v5429_v50  ;;  %3669 = vmatpush1.bf16.msra.mxu1 %v5432_v51  ;;  %v5511_v50 = vld [vmem:[#allocation10 + $0x28] sm:$0xff]  }
 0x378   :  { %3588 = vmatprep.subr.bf16.mxu0 %v5437_v52  ;;  %3670 = vmatprep.subr.bf16.mxu1 %v5440_v53  ;;  %v5512_v51 = vld [vmem:[#allocation10 + $0xa8] sm:$0xff]   ;;  %v5513_v52 = vld [vmem:[#allocation10 + $0x70] sm:$0xff]  }
 0x379   :  { %v5514_v53 = vld [vmem:[#allocation10 + $0xf0] sm:$0xff]  }
 0x37b   :  { %3589 = vmatpush1.bf16.msra.mxu0 %v5435_v54  ;;  %3671 = vmatpush1.bf16.msra.mxu1 %v5438_v55  ;;  %v5515_v54 = vld [vmem:[#allocation10 + $0x30] sm:$0xff]  }
 0x37c   :  { %3590 = vmatprep.subr.bf16.mxu0 %v5443_v23  ;;  %3672 = vmatprep.subr.bf16.mxu1 %v5446_v56  ;;  %v5516_v55 = vld [vmem:[#allocation10 + $0xb0] sm:$0xff]   ;;  %v5517_v23 = vld [vmem:[#allocation10 + $0x78] sm:$0xff]  }
 0x37d   :  { %v5518_v56 = vld [vmem:[#allocation10 + $0xf8] sm:$0xff]  }
 0x37f   :  { %3591 = vmatpush1.bf16.msra.mxu0 %v5441_v57  ;;  %3673 = vmatpush1.bf16.msra.mxu1 %v5444_v58  ;;  %v5519_v57 = vld [vmem:[#allocation10 + $0x38] sm:$0xff]  }
 0x380   :  { %3592 = vmatprep.subr.bf16.mxu0 %v5449_v59  ;;  %3674 = vmatprep.subr.bf16.mxu1 %v5452_v31  ;;  %v5520_v58 = vld [vmem:[#allocation10 + $0xb8] sm:$0xff]   ;;  %v2879_v59 = vsub.s32 4, %v5838_v22  ;;  %v5910_v31 = vld [vmem:[#allocation11] sm:$0xff] }
 0x383   :  { %3593 = vmatpush1.bf16.msra.mxu0 %v5447_v60  ;;  %3675 = vmatpush1.bf16.msra.mxu1 %v5450_v61  ;;  %v2880_v60 = vrot.slane %v5910_v31, %v2879_v59  ;;  %v2888_v61 = vrot.slane %v5857_v42, %v2879_v59 }
 0x384   :  { %3594 = vmatprep.subr.bf16.mxu0 %v5455_v62  ;;  %3676 = vmatprep.subr.bf16.mxu1 %v5458_v63  ;;  %v5914_v62 = vld [vmem:[#allocation11 + $0x8] sm:$0xff] }
 0x385   :  { %v2884_v63 = vrot.slane %v5914_v62, %v2879_v59 }
 0x387   :  { %3595 = vmatpush1.bf16.msra.mxu0 %v5453_v0  ;;  %3677 = vmatpush1.bf16.msra.mxu1 %v5456_v1  ;;  %v5917_v0 = vld [vmem:[#allocation11 + $0x18] sm:$0xff] }
 0x388   :  { %3596 = vmatprep.subr.bf16.mxu0 %v5461_v2  ;;  %3678 = vmatprep.subr.bf16.mxu1 %v5464_v3  ;;  %v2892_v1 = vrot.slane %v5917_v0, %v2879_v59 }
 0x38b   :  { %3597 = vmatpush1.bf16.msra.mxu0 %v5459_v4  ;;  %3679 = vmatpush1.bf16.msra.mxu1 %v5462_v5 }
 0x38c   :  { %3598 = vmatprep.subr.bf16.mxu0 %v5467_v6  ;;  %3680 = vmatprep.subr.bf16.mxu1 %v5470_v7 }
 0x38f   :  { %3599 = vmatpush1.bf16.msra.mxu0 %v5465_v8  ;;  %3681 = vmatpush1.bf16.msra.mxu1 %v5468_v9 }
 0x390   :  { %3600 = vmatprep.subr.bf16.mxu0 %v5473_v15  ;;  %3682 = vmatprep.subr.bf16.mxu1 %v5476_v10 }
 0x393   :  { %3601 = vmatpush1.bf16.msra.mxu0 %v5471_v11  ;;  %3683 = vmatpush1.bf16.msra.mxu1 %v5474_v12 }
 0x394   :  { %3602 = vmatprep.subr.bf16.mxu0 %v5479_v13  ;;  %3684 = vmatprep.subr.bf16.mxu1 %v5482_v16 }
 0x397   :  { %3603 = vmatpush1.bf16.msra.mxu0 %v5477_v17  ;;  %3685 = vmatpush1.bf16.msra.mxu1 %v5480_v20 }
 0x398   :  { %3604 = vmatprep.subr.bf16.mxu0 %v5485_v27  ;;  %3686 = vmatprep.subr.bf16.mxu1 %v5488_v25 }
 0x39b   :  { %3605 = vmatpush1.bf16.msra.mxu0 %v5483_v28  ;;  %3687 = vmatpush1.bf16.msra.mxu1 %v5486_v14 }
 0x39c   :  { %4703 = vmatprep.subr.bf16.mxu0 %v5489_v18  ;;  %4725 = vmatprep.subr.bf16.mxu1 %v5490_v29 }
 0x39e   :  { %3607 = vmatmul.mubr.bf16.vlgmr.msra.gmra.mrb[8].mxu0 %v2747_v26  ;;  %3689 = vmatmul.mubr.bf16.vlgmr.msra.gmra.mrb[8].mxu1 %v2747_v26 }
 0x39f   :  { %4704 = vmatpush3.bf16.msra.mxu0 %v5491_v19  ;;  %4726 = vmatpush3.bf16.msra.mxu1 %v5492_v30 }
 0x3a0   :  { %4705 = vmatprep.subr.bf16.mxu0 %v5493_v32  ;;  %4727 = vmatprep.subr.bf16.mxu1 %v5494_v33 }
 0x3a3   :  { %4706 = vmatpush3.bf16.msra.mxu0 %v5495_v34  ;;  %4728 = vmatpush3.bf16.msra.mxu1 %v5496_v35 }
 0x3a4   :  { %4707 = vmatprep.subr.bf16.mxu0 %v5497_v36  ;;  %4729 = vmatprep.subr.bf16.mxu1 %v5498_v24 }
 0x3a7   :  { %4708 = vmatpush3.bf16.msra.mxu0 %v5499_v37  ;;  %4730 = vmatpush3.bf16.msra.mxu1 %v5500_v38 }
 0x3a8   :  { %4709 = vmatprep.subr.bf16.mxu0 %v5501_v39  ;;  %4731 = vmatprep.subr.bf16.mxu1 %v5502_v40 }
 0x3ab   :  { %4710 = vmatpush3.bf16.msra.mxu0 %v5503_v41  ;;  %4732 = vmatpush3.bf16.msra.mxu1 %v5504_v43 }
 0x3ac   :  { %4711 = vmatprep.subr.bf16.mxu0 %v5505_v44  ;;  %4733 = vmatprep.subr.bf16.mxu1 %v5506_v45 }
 0x3af   :  { %4712 = vmatpush3.bf16.msra.mxu0 %v5507_v46  ;;  %4734 = vmatpush3.bf16.msra.mxu1 %v5508_v47 }
 0x3b0   :  { %4713 = vmatprep.subr.bf16.mxu0 %v5509_v48  ;;  %4735 = vmatprep.subr.bf16.mxu1 %v5510_v49 }
 0x3b3   :  { %4714 = vmatpush3.bf16.msra.mxu0 %v5511_v50  ;;  %4736 = vmatpush3.bf16.msra.mxu1 %v5512_v51 }
 0x3b4   :  { %4715 = vmatprep.subr.bf16.mxu0 %v5513_v52  ;;  %4737 = vmatprep.subr.bf16.mxu1 %v5514_v53 }
 0x3b7   :  { %4716 = vmatpush3.bf16.msra.mxu0 %v5515_v54  ;;  %4738 = vmatpush3.bf16.msra.mxu1 %v5516_v55 }
 0x3b8   :  { %4717 = vmatprep.subr.bf16.mxu0 %v5517_v23  ;;  %4739 = vmatprep.subr.bf16.mxu1 %v5518_v56 }
 0x3bb   :  { %4718 = vmatpush3.bf16.msra.mxu0 %v5519_v57  ;;  %4740 = vmatpush3.bf16.msra.mxu1 %v5520_v58 }
 0x471   :  { %v3608_v2 = vpop.f32.mrb[8].mxu0  ;;  %v3690_v3 = vpop.f32.mrb[8].mxu1 }
 0x472   :  { %v4755_v4 = vadd.f32 %v3608_v2, %v2880_v60  ;;  %v4757_v5 = vadd.f32 %v3690_v3, %v2888_v61  ;;  %v3610_v6 = vpop.f32.mrb[9].mxu0  ;;  %v3692_v7 = vpop.f32.mrb[9].mxu1 }
 0x473   :  { %v4756_v8 = vadd.f32 %v3610_v6, %v2884_v63  ;;  %v4758_v9 = vadd.f32 %v3692_v7, %v2892_v1  ;;  %v3612_v15 = vpop.f32.mrb[10].mxu0  ;;  %v3694_v10 = vpop.f32.mrb[10].mxu1 }
 0x474   :  { %v5920_v11 = vmax.f32 %v4755_v4, 0.0  ;;  %v5922_v42 = vmax.f32 %v4757_v5, 0.0  ;;  %v3613_v12 = vpop.f32.mrb[11].mxu0  ;;  %v3695_v13 = vpop.f32.mrb[11].mxu1 }
 0x475   :  { %v5924_v16 = vmax.f32 %v4756_v8, 0.0  ;;  %v5926_v17 = vmax.f32 %v4758_v9, 0.0 }
 0x476   :  { %v3701_v20 = vrot.slane %v5920_v11, 4  ;;  %v3729_v27 = vmul.f32 %v5920_v11, %v5920_v11  ;;  %v3713_v25 = vrot.slane %v5922_v42, 4  ;;  %v3731_v28 = vmul.f32 %v5922_v42, %v5922_v42 }
 0x477   :  { %v3707_v14 = vrot.slane %v5924_v16, 4  ;;  %v3730_v26 = vmul.f32 %v5924_v16, %v5924_v16  ;;  %v3719_v18 = vrot.slane %v5926_v17, 4  ;;  %v3732_v29 = vmul.f32 %v5926_v17, %v5926_v17 }
 0x478   :  { %v3702_v19 = vadd.f32 %v3701_v20, %v5920_v11  ;;  %v3733_v30 = vrot.slane %v3729_v27, 4  ;;  %v3714_v32 = vadd.f32 %v3713_v25, %v5922_v42  ;;  %v3745_v33 = vrot.slane %v3731_v28, 4 }
 0x479   :  { %v3708_v34 = vadd.f32 %v3707_v14, %v5924_v16  ;;  %v3739_v35 = vrot.slane %v3730_v26, 4  ;;  %v3720_v36 = vadd.f32 %v3719_v18, %v5926_v17  ;;  %v3751_v24 = vrot.slane %v3732_v29, 4 }
 0x47a   :  { %v3703_v37 = vrot.slane %v3702_v19, 2  ;;  %v3734_v38 = vadd.f32 %v3733_v30, %v3729_v27  ;;  %v3715_v39 = vrot.slane %v3714_v32, 2  ;;  %v3746_v40 = vadd.f32 %v3745_v33, %v3731_v28 }
 0x47b   :  { %v3709_v41 = vrot.slane %v3708_v34, 2  ;;  %v3740_v43 = vadd.f32 %v3739_v35, %v3730_v26  ;;  %v3721_v44 = vrot.slane %v3720_v36, 2  ;;  %v3752_v45 = vadd.f32 %v3751_v24, %v3732_v29 }
 0x47c   :  { %v3704_v46 = vadd.f32 %v3703_v37, %v3702_v19  ;;  %v3735_v47 = vrot.slane %v3734_v38, 2  ;;  %v3716_v48 = vadd.f32 %v3715_v39, %v3714_v32  ;;  %v3747_v49 = vrot.slane %v3746_v40, 2 }
 0x47d   :  { %v3710_v50 = vadd.f32 %v3709_v41, %v3708_v34  ;;  %v3741_v51 = vrot.slane %v3740_v43, 2  ;;  %v3722_v52 = vadd.f32 %v3721_v44, %v3720_v36  ;;  %v3753_v53 = vrot.slane %v3752_v45, 2  ;;  %v5544_v44 = vld [vmem:[#allocation11 + $0x10] sm:$0xff] }
 0x47e   :  { %v3705_v54 = vrot.slane %v3704_v46, 1  ;;  %v3736_v55 = vadd.f32 %v3735_v47, %v3734_v38  ;;  %v3717_v23 = vrot.slane %v3716_v48, 1  ;;  %v3748_v56 = vadd.f32 %v3747_v49, %v3746_v40 }
 0x47f   :  { %v3711_v57 = vrot.slane %v3710_v50, 1  ;;  %v3742_v58 = vadd.f32 %v3741_v51, %v3740_v43  ;;  %v3723_v59 = vrot.slane %v3722_v52, 1  ;;  %v3754_v60 = vadd.f32 %v3753_v53, %v3752_v45 }
 0x480   :  { %v3706_v61 = vadd.f32 %v3705_v54, %v3704_v46  ;;  %v3737_v63 = vrot.slane %v3736_v55, 1  ;;  %v3718_v1 = vadd.f32 %v3717_v23, %v3716_v48  ;;  %v3749_v2 = vrot.slane %v3748_v56, 1 }
 0x481   :  { %v3712_v3 = vadd.f32 %v3711_v57, %v3710_v50  ;;  %v3743_v4 = vrot.slane %v3742_v58, 1  ;;  %v3724_v5 = vadd.f32 %v3723_v59, %v3722_v52  ;;  %v3755_v6 = vrot.slane %v3754_v60, 1 }
 0x482   :  { %v3725_v7 = vmul.f32 0.125, %v3706_v61  ;;  %v3738_v8 = vadd.f32 %v3737_v63, %v3736_v55  ;;  %v3727_v9 = vmul.f32 0.125, %v3718_v1  ;;  %v3750_v15 = vadd.f32 %v3749_v2, %v3748_v56 }
 0x483   :  { %v3744_v10 = vadd.f32 %v3743_v4, %v3742_v58  ;;  %v3756_v12 = vadd.f32 %v3755_v6, %v3754_v60  ;;  %v3726_v13 = vmul.f32 0.125, %v3712_v3  ;;  %v3728_v20 = vmul.f32 0.125, %v3724_v5 }
 0x484   :  { %v3757_v27 = vmul.f32 0.125, %v3738_v8  ;;  %v3761_v25 = vmul.f32 %v3725_v7, %v3725_v7  ;;  %v3759_v28 = vmul.f32 0.125, %v3750_v15  ;;  %v3763_v14 = vmul.f32 %v3727_v9, %v3727_v9 }
 0x485   :  { %v3758_v26 = vmul.f32 0.125, %v3744_v10  ;;  %v3760_v18 = vmul.f32 0.125, %v3756_v12  ;;  %v3762_v29 = vmul.f32 %v3726_v13, %v3726_v13  ;;  %v3764_v19 = vmul.f32 %v3728_v20, %v3728_v20 }
 0x486   :  { %v3765_v30 = vsub.f32 %v3757_v27, %v3761_v25  ;;  %v3767_v32 = vsub.f32 %v3759_v28, %v3763_v14  ;;  %v3803_v43 = vsub.s32 5, %v5838_v22  ;;  %v3823_v52 = vsub.s32 6, %v5838_v22 }
 0x487   :  { %v3766_v33 = vsub.f32 %v3758_v26, %v3762_v29  ;;  %v3768_v34 = vsub.f32 %v3760_v18, %v3764_v19  ;;  %v4186_v14 = vand.u32 127, %v317_v21 }
 0x488   :  { %v3769_v35 = vadd.f32 1e-05, %v3765_v30  ;;  %v3771_v36 = vadd.f32 1e-05, %v3767_v32 }
 0x489   :  { %v3770_v24 = vadd.f32 1e-05, %v3766_v33  ;;  %v3772_v37 = vadd.f32 1e-05, %v3768_v34  ;;  %vm4187_vm1 = vcmp.lt.s32.totalorder %v4186_v14, 10 }
 0x48a   :  { %5529 = vrsqrt.f32 %v3769_v35 }
 0x48b   :  { %5531 = vrsqrt.f32 %v3771_v36 }
 0x48c   :  { %5533 = vrsqrt.f32 %v3770_v24 }
 0x48d   :  { %5535 = vrsqrt.f32 %v3772_v37 }
 0x494   :  { %v5530_v38 = vpop.eup %5529 }
 0x495   :  { %v5532_v39 = vpop.eup %5531  ;;  %v3777_v40 = vmul.f32 %v5910_v31, %v5530_v38 }
 0x496   :  { %v5534_v41 = vpop.eup %5533  ;;  %v3779_v45 = vmul.f32 %v5544_v44, %v5532_v39 }
 0x497   :  { %v5536_v46 = vpop.eup %5535  ;;  %v3778_v47 = vmul.f32 %v5914_v62, %v5534_v41  ;;  %v3781_v48 = vmul.f32 %v3777_v40, %v3725_v7  ;;  %v3804_v54 = vrot.slane %v3777_v40, %v3803_v43 }
 0x498   :  { %v3780_v49 = vmul.f32 %v5917_v0, %v5536_v46  ;;  %v3783_v50 = vmul.f32 %v3779_v45, %v3727_v9  ;;  %v3812_v56 = vrot.slane %v3779_v45, %v3803_v43 }
 0x499   :  { %v3782_v51 = vmul.f32 %v3778_v47, %v3726_v13  ;;  %v3789_v53 = vrot.slane %v3781_v48, 7  ;;  %v3808_v58 = vrot.slane %v3778_v47, %v3803_v43  ;;  %v3817_v3 = vmul.f32 %v3804_v54, %v5920_v11 }
 0x49a   :  { %v3784_v55 = vmul.f32 %v3780_v49, %v3728_v20  ;;  %v3791_v23 = vrot.slane %v3783_v50, 7  ;;  %v3816_v61 = vrot.slane %v3780_v49, %v3803_v43  ;;  %v3819_v6 = vmul.f32 %v3812_v56, %v5922_v42 }
 0x49b   :  { %v3790_v57 = vrot.slane %v3782_v51, 7  ;;  %v3797_v59 = vsub.f32 %v5910_v31, %v3789_v53  ;;  %v3818_v7 = vmul.f32 %v3808_v58, %v5924_v16 }
 0x49c   :  { %v3792_v60 = vrot.slane %v3784_v55, 7  ;;  %v3799_v63 = vsub.f32 %v5544_v44, %v3791_v23  ;;  %v3820_v9 = vmul.f32 %v3816_v61, %v5926_v17 }
 0x49d   :  { %v3798_v1 = vsub.f32 %v5914_v62, %v3790_v57  ;;  %v3824_v2 = vrot.slane %v3797_v59, %v3823_v52 }
 0x49e   :  { %v3800_v4 = vsub.f32 %v5917_v0, %v3792_v60  ;;  %v3832_v5 = vrot.slane %v3799_v63, %v3823_v52  ;;  %v3911_v0 = vsub.s32 7, %v5838_v22 }
 0x49f   :  { %v3828_v8 = vrot.slane %v3798_v1, %v3823_v52  ;;  %v3837_v10 = vadd.f32 %v3824_v2, %v3817_v3 }
 0x4a0   :  { %v3836_v15 = vrot.slane %v3800_v4, %v3823_v52  ;;  %v3839_v13 = vadd.f32 %v3832_v5, %v3819_v6  ;;  %v3912_v16 = vrot.slane %v5910_v31, %v3911_v0 }
 0x4a1   :  { %v3838_v12 = vadd.f32 %v3828_v8, %v3818_v7  ;;  %v3841_v25 = vpack.c.bf16 %v3837_v10, %v3837_v10 }
 0x4a2   :  { %v3840_v20 = vadd.f32 %v3836_v15, %v3820_v9  ;;  %v3843_v11 = vpack.c.bf16 %v3839_v13, %v3839_v13 }
 0x4a3   :  { %v3842_v27 = vpack.c.bf16 %v3838_v12, %v3838_v12 }
 0x4a4   :  { %v3844_v62 = vpack.c.bf16 %v3840_v20, %v3840_v20 }
 0x4a5   :  { %4137 = vmatprep.mubr.bf16.mxu0 %v3842_v27 }
 0x4a6   :  { %4177 = vmatprep.mubr.bf16.mxu1 %v3844_v62  ;;  %4138 = vmatmul.mubr.bf16.vlgmr.msra.gmra.mrb[12].mxu0 %v3841_v25 }
 0x4a7   :  { %4178 = vmatmul.mubr.bf16.vlgmr.msra.gmra.mrb[12].mxu1 %v3843_v11 }
 0x579   :  { %v4719_v42 = vpop.f32.mrb[12].mxu0 }
 0x57a   :  { %v4741_v28 = vpop.f32.mrb[12].mxu1  ;;  %v4720_v17 = vpop.f32.mrb[13].mxu0 }
 0x57b   :  { %v4721_v26 = vadd.f32 %v4720_v17, %v4719_v42  ;;  %v4742_v18 = vpop.f32.mrb[13].mxu1  ;;  %v4722_v29 = vpop.f32.mrb[14].mxu0 }
 0x57c   :  { %v4743_v19 = vadd.f32 %v4742_v18, %v4741_v28  ;;  %v4744_v30 = vpop.f32.mrb[14].mxu1  ;;  %v4723_v32 = vpop.f32.mrb[15].mxu0 }
 0x57d   :  { %v4140_v33 = vadd.f32 %v4721_v26, %v3912_v16  ;;  %v4745_v34 = vpop.f32.mrb[15].mxu1 }
 0x57f   :  { %v4180_v35 = vadd.f32 %v4743_v19, %v4140_v33 }
 0x581   :  { %v4188_v36 = vsel %vm4187_vm1, %v4180_v35, -1e+30 }
 0x582   :  { %4189 = vmax.xlane.f32.xlu0 %v4188_v36 }
 0x60f   :  { %v4190_v22 = vpop.xlane.xlu0 %4189 }
 0x610   :  { %v4191_v24 = vsub.f32 %v4188_v36, %v4190_v22 }
 0x612   :  { %v4192_v37 = vmul.f32 1.442695, %v4191_v24 }
 0x614   :  { %5537 = vpow2.f32 %v4192_v37 }
 0x61e   :  { %v5538_v31 = vpop.eup %5537 }
 0x61f   :  { %4194 = vadd.xlane.f32.xlu0 %v5538_v31 }
 0x6ac   :  { %v4195_v38 = vpop.xlane.xlu0 %4194 }
 0x6ad   :  { %5539 = vrcp.f32 %v4195_v38 }
 0x6b7   :  { %v5540_v21 = vpop.eup %5539 }
 0x6b8   :  { %v4197_v39 = vmul.f32 %v5540_v21, %v5538_v31 }
 0x6ba   :  { %4198 = vst [vmem:[#allocation13] sm:$0xff] %v4197_v39 }
 0x6bb   :  { %5688 = shalt.err (!%p5685_p10)
}
 0x6bc   :  { %s5689_s22 = scalar_lea.hbm %s5977_s6, 128 }
 0x6bd   :  { %p5690_p11 = scmp.ne.s32.totalorder %s5977_s6, %s5689_s22  ;;  %p5693_p12 = scmp.lt.u32.totalorder %s5689_s22, %s5977_s6 }
 0x6bf   :  { %p5695_p13 = pnand %p5693_p12, %p5690_p11 }
 0x6c1   :  { %5698 = shalt.err (!%p5695_p13)
}
 0x6c2   :  { %4208 = dma.vmem_to_hbm [thread:$0]  %s4206_s21, 128, %s5977_s6, [#allocation4]  }
 0x6c3   :  { %5707 = dma.done.wait [#allocation4], 128  }
 0x6c4   :  { %5708 = vsyncadd [#allocation4], 4294967168 }
 0x6c5   :  { %4212 = vsyncpa [#allocation3], 1 }
 0x6c6   :  { %4213 = vsyncpa [#allocation6], 1 }
 0x6c7   :  { %4214 = vsyncpa [#allocation9], 1 }
 0x6c8   :  { %4215 = vsyncpa [#allocation12], 1 }
 0x6c9   :  { %4216 = vsyncpa [#allocation4], 1 }

</bundles_post_ra>
